<compile_context>
chip_gen: v7x
topology: tpu7x:2x2x1
jax: 0.10.0
libtpu: 0.0.40
codegen_flags: <defaults>
</compile_context>

<pallas_src>
import functools

import jax
import jax.numpy as jnp
from jax.experimental import pallas as pl
from jax.experimental.pallas import tpu as pltpu

KH = KW = 3  # 3x3 conv kernels for the additional_channel transforms


def _input_pipeline_kernel(img_ref, w_ref, b_ref, out_ref, pad_ref, *, W, padl):
    # img_ref: (B, C, H*W)               VMEM  lane-dense flattened NCHW input
    # w_ref:   (T*C*KH*KW,)              SMEM  flattened conv weights
    # b_ref:   (T,)                      SMEM  conv biases
    # out_ref: (B, C+T, H*W)             VMEM  lane-dense flattened output
    # pad_ref: (C, B, padl + H*W + padl) VMEM  scratch: flattened image with zero halos
    B, C, HW = img_ref.shape
    T = out_ref.shape[1] - C

    # filter is None -> new_img = img.clone(): straight aligned lane-dense copy.
    out_ref[:, 0:C, :] = img_ref[...].astype(out_ref.dtype)

    # Build the zero-halo'd flattened image in VMEM (replaces the wrapper-side jnp.pad).
    # Interior starts at `padl` (multiple of 128) -> the big store is lane-aligned.
    pad_ref[...] = jnp.zeros(pad_ref.shape, pad_ref.dtype)
    for c in range(C):
        pad_ref[c, :, pl.ds(padl, HW)] = img_ref[:, c, :].astype(jnp.float32)

    # Column-validity masks. The flattened zero halo handles vertical (dy) out-of-image
    # taps; horizontal taps that would wrap across a row boundary must be masked.
    col = jax.lax.broadcasted_iota(jnp.int32, (B, HW), 1) % W
    mask_dx = {
        0: (col > 0).astype(jnp.float32),       # left tap invalid at col == 0
        2: (col < W - 1).astype(jnp.float32),   # right tap invalid at col == W-1
    }

    for t in range(T):
        # 3x3 conv, padding=1, C->1 channels, fully unrolled on the VPU.
        acc = jnp.zeros((B, HW), jnp.float32)
        for c in range(C):
            for dy in range(KH):
                for dx in range(KW):
                    w = w_ref[t * C * KH * KW + c * KH * KW + dy * KW + dx]
                    start = padl + (dy - 1) * W + (dx - 1)
                    tap = pad_ref[c, :, pl.ds(start, HW)]
                    if dx != 1:
                        tap = tap * mask_dx[dx]
                    acc = acc + tap * w
        acc = acc + b_ref[t]
        # new_channel = (new_channel - new_channel.min()) / new_channel.max()
        # Global (whole-batch) min/max, exact scalar reciprocal hoisted out of the tensor op.
        mn = jnp.min(acc, keepdims=True)
        mx = jnp.max(acc, keepdims=True)
        inv = 1.0 / mx
        out_ref[:, C + t, :] = ((acc - mn) * inv).astype(out_ref.dtype)


def input_pipeline_forward(img, conv_weights, conv_biases):
    """img: (B, 3, H, W) f32. conv_weights: (T, 3, KH, KW). conv_biases: (T,)."""
    B, C, H, W = img.shape
    T = conv_weights.shape[0]
    HW = H * W
    # Lane-aligned halo width for the flattened padded scratch (must cover W+1 taps).
    padl = ((W + 1 + 127) // 128) * 128

    # Free reshapes only (contiguous views) -- no jnp.pad HBM round trip.
    img_flat = img.reshape(B, C, HW).astype(jnp.float32)
    w_flat = conv_weights.reshape(-1).astype(jnp.float32)
    b = conv_biases.astype(jnp.float32)

    out_flat = pl.pallas_call(
        functools.partial(_input_pipeline_kernel, W=W, padl=padl),
        out_shape=jax.ShapeDtypeStruct((B, C + T, HW), jnp.float32),
        in_specs=[
            pl.BlockSpec(memory_space=pltpu.MemorySpace.VMEM),
            pl.BlockSpec(memory_space=pltpu.MemorySpace.SMEM),
            pl.BlockSpec(memory_space=pltpu.MemorySpace.SMEM),
        ],
        out_specs=pl.BlockSpec(memory_space=pltpu.MemorySpace.VMEM),
        scratch_shapes=[pltpu.VMEM((C, B, padl + HW + padl), jnp.float32)],
    )(img_flat, w_flat, b)
    return out_flat.reshape(B, C + T, H, W)


def _reference(img, conv_weights, conv_biases):
    # Pure-JAX reference mirroring the PyTorch forward (filter=None + convs + min/max norm + cat).
    B, C, H, W = img.shape
    new_img = img.astype(jnp.float32)
    imgp = jnp.pad(new_img, ((0, 0), (0, 0), (1, 1), (1, 1)))
    for t in range(conv_weights.shape[0]):
        acc = jnp.zeros((B, H, W), jnp.float32)
        for c in range(C):
            for dy in range(KH):
                for dx in range(KW):
                    acc = acc + imgp[:, c, dy:dy + H, dx:dx + W] * conv_weights[t, c, dy, dx]
        acc = acc + conv_biases[t]
        norm = (acc - acc.min()) / acc.max()
        new_img = jnp.concatenate([new_img, norm[:, None, :, :]], axis=-3)
    return new_img


if __name__ == "__main__":
    key = jax.random.PRNGKey(0)
    k_img, k_w, k_b = jax.random.split(key, 3)

    B, C, H, W = 2, 3, 16, 16   # NCHW, 3 input channels (as implied by _nb_channel = 3 + ...)
    T = 2                       # two additional_channel transforms -> nb_channel = 5

    img = jax.random.uniform(k_img, (B, C, H, W), dtype=jnp.float32)
    # Deterministic synthetic conv params (shapes match nn.Conv2d(3, 1, 3, padding=1)).
    conv_w = jax.random.normal(k_w, (T, C, KH, KW), dtype=jnp.float32) * 0.1
    conv_b = jax.random.normal(k_b, (T,), dtype=jnp.float32) * 0.1

    out = jax.block_until_ready(input_pipeline_forward(img, conv_w, conv_b))
    ref = _reference(img, conv_w, conv_b)

    assert out.shape == (B, C + T, H, W), out.shape
    assert jnp.allclose(out, ref, atol=1e-5, rtol=1e-5), float(jnp.max(jnp.abs(out - ref)))
    print("KERNEL_OK")
</pallas_src>

<mosaic_0001>
module attributes {stable_mosaic.version = 11 : i64} {
  func.func @_input_pipeline_kernel(%arg0: memref<2x3x256xf32, #tpu.memory_space<vmem>>, %arg1: memref<54xf32, #tpu.memory_space<smem>>, %arg2: memref<2xf32, #tpu.memory_space<smem>>, %arg3: memref<2x5x256xf32, #tpu.memory_space<vmem>>, %arg4: memref<3x2x512xf32, #tpu.memory_space<vmem>>) attributes {dimension_semantics = [], scalar_prefetch = 0 : i64, scratch_operands = 1 : i64, tpu.core_type = #tpu.core_type<tc>} {
    %c0 = arith.constant 0 : index
    %c0_0 = arith.constant 0 : index
    %c0_1 = arith.constant 0 : index
    %0 = vector.load %arg0[%c0, %c0_0, %c0_1] : memref<2x3x256xf32, #tpu.memory_space<vmem>>, vector<2x3x256xf32>
    %c0_2 = arith.constant 0 : index
    %c0_3 = arith.constant 0 : index
    %c0_4 = arith.constant 0 : index
    %1 = vector.load %arg3[%c0_2, %c0_3, %c0_4] : memref<2x5x256xf32, #tpu.memory_space<vmem>>, vector<2x3x256xf32>
    tpu.vector_store %arg3[%c0_2, %c0_3, %c0_4], %0 {strides = array<i32>} : memref<2x5x256xf32, #tpu.memory_space<vmem>>, vector<2x3x256xf32>,
    %cst = arith.constant 0.000000e+00 : f32
    %2 = vector.broadcast %cst : f32 to vector<3x2x512xf32>
    %c0_5 = arith.constant 0 : index
    %c0_6 = arith.constant 0 : index
    %c0_7 = arith.constant 0 : index
    %3 = vector.load %arg4[%c0_5, %c0_6, %c0_7] : memref<3x2x512xf32, #tpu.memory_space<vmem>>, vector<3x2x512xf32>
    tpu.vector_store %arg4[%c0_5, %c0_6, %c0_7], %2 {strides = array<i32>} : memref<3x2x512xf32, #tpu.memory_space<vmem>>, vector<3x2x512xf32>,
    %c0_8 = arith.constant 0 : index
    %c0_9 = arith.constant 0 : index
    %c0_10 = arith.constant 0 : index
    %4 = vector.load %arg0[%c0_8, %c0_9, %c0_10] : memref<2x3x256xf32, #tpu.memory_space<vmem>>, vector<2x1x256xf32>
    %5 = vector.shape_cast %4 : vector<2x1x256xf32> to vector<2x256xf32>
    %c0_11 = arith.constant 0 : index
    %c0_12 = arith.constant 0 : index
    %c128 = arith.constant 128 : index
    %6 = vector.load %arg4[%c0_11, %c0_12, %c128] : memref<3x2x512xf32, #tpu.memory_space<vmem>>, vector<1x2x256xf32>
    %7 = vector.shape_cast %6 : vector<1x2x256xf32> to vector<2x256xf32>
    %8 = vector.shape_cast %5 : vector<2x256xf32> to vector<1x2x256xf32>
    tpu.vector_store %arg4[%c0_11, %c0_12, %c128], %8 {strides = array<i32>} : memref<3x2x512xf32, #tpu.memory_space<vmem>>, vector<1x2x256xf32>,
    %c0_13 = arith.constant 0 : index
    %c1 = arith.constant 1 : index
    %c0_14 = arith.constant 0 : index
    %9 = vector.load %arg0[%c0_13, %c1, %c0_14] : memref<2x3x256xf32, #tpu.memory_space<vmem>>, vector<2x1x256xf32>
    %10 = vector.shape_cast %9 : vector<2x1x256xf32> to vector<2x256xf32>
    %c1_15 = arith.constant 1 : index
    %c0_16 = arith.constant 0 : index
    %c128_17 = arith.constant 128 : index
    %11 = vector.load %arg4[%c1_15, %c0_16, %c128_17] : memref<3x2x512xf32, #tpu.memory_space<vmem>>, vector<1x2x256xf32>
    %12 = vector.shape_cast %11 : vector<1x2x256xf32> to vector<2x256xf32>
    %13 = vector.shape_cast %10 : vector<2x256xf32> to vector<1x2x256xf32>
    tpu.vector_store %arg4[%c1_15, %c0_16, %c128_17], %13 {strides = array<i32>} : memref<3x2x512xf32, #tpu.memory_space<vmem>>, vector<1x2x256xf32>,
    %c0_18 = arith.constant 0 : index
    %c2 = arith.constant 2 : index
    %c0_19 = arith.constant 0 : index
    %14 = vector.load %arg0[%c0_18, %c2, %c0_19] : memref<2x3x256xf32, #tpu.memory_space<vmem>>, vector<2x1x256xf32>
    %15 = vector.shape_cast %14 : vector<2x1x256xf32> to vector<2x256xf32>
    %c2_20 = arith.constant 2 : index
    %c0_21 = arith.constant 0 : index
    %c128_22 = arith.constant 128 : index
    %16 = vector.load %arg4[%c2_20, %c0_21, %c128_22] : memref<3x2x512xf32, #tpu.memory_space<vmem>>, vector<1x2x256xf32>
    %17 = vector.shape_cast %16 : vector<1x2x256xf32> to vector<2x256xf32>
    %18 = vector.shape_cast %15 : vector<2x256xf32> to vector<1x2x256xf32>
    tpu.vector_store %arg4[%c2_20, %c0_21, %c128_22], %18 {strides = array<i32>} : memref<3x2x512xf32, #tpu.memory_space<vmem>>, vector<1x2x256xf32>,
    %19 = tpu.iota {dimensions = array<i32: 1>} : vector<2x256xi32>
    %c16_i32 = arith.constant 16 : i32
    %c0_i32 = arith.constant 0 : i32
    %20 = arith.cmpi eq, %c16_i32, %c0_i32 : i32
    %c1_i32 = arith.constant 1 : i32
    %21 = arith.select %20, %c1_i32, %c16_i32 : i32
    %22 = vector.broadcast %21 : i32 to vector<2x256xi32>
    %23 = arith.remsi %19, %22 : vector<2x256xi32>
    %c0_i32_23 = arith.constant 0 : i32
    %24 = vector.broadcast %c0_i32_23 : i32 to vector<2x256xi32>
    %25 = arith.cmpi ne, %23, %24 : vector<2x256xi32>
    %c0_i32_24 = arith.constant 0 : i32
    %26 = vector.broadcast %c0_i32_24 : i32 to vector<2x256xi32>
    %27 = arith.cmpi slt, %23, %26 : vector<2x256xi32>
    %c0_i32_25 = arith.constant 0 : i32
    %28 = arith.cmpi slt, %21, %c0_i32_25 : i32
    %29 = vector.broadcast %28 : i1 to vector<2x256xi1>
    %30 = vector.broadcast %29 : vector<2x256xi1> to vector<2x256xi1>
    %31 = arith.xori %27, %30 : vector<2x256xi1>
    %32 = arith.andi %31, %25 : vector<2x256xi1>
    %33 = vector.broadcast %21 : i32 to vector<2x256xi32>
    %34 = arith.addi %23, %33 : vector<2x256xi32>
    %35 = arith.select %32, %34, %23 : vector<2x256xi1>, vector<2x256xi32>
    %c0_i32_26 = arith.constant 0 : i32
    %36 = vector.broadcast %c0_i32_26 : i32 to vector<2x256xi32>
    %37 = arith.cmpi sgt, %35, %36 : vector<2x256xi32>
    %38 = arith.extui %37 : vector<2x256xi1> to vector<2x256xi32>
    %39 = arith.sitofp %38 : vector<2x256xi32> to vector<2x256xf32>
    %c15_i32 = arith.constant 15 : i32
    %40 = vector.broadcast %c15_i32 : i32 to vector<2x256xi32>
    %41 = arith.cmpi slt, %35, %40 : vector<2x256xi32>
    %42 = arith.extui %41 : vector<2x256xi1> to vector<2x256xi32>
    %43 = arith.sitofp %42 : vector<2x256xi32> to vector<2x256xf32>
    %cst_27 = arith.constant 0.000000e+00 : f32
    %44 = vector.broadcast %cst_27 : f32 to vector<2x256xf32>
    %c0_28 = arith.constant 0 : index
    %45 = memref.load %arg1[%c0_28] : memref<54xf32, #tpu.memory_space<smem>>
    %c0_29 = arith.constant 0 : index
    %c0_30 = arith.constant 0 : index
    %c111 = arith.constant 111 : index
    %46 = vector.load %arg4[%c0_29, %c0_30, %c111] : memref<3x2x512xf32, #tpu.memory_space<vmem>>, vector<1x2x256xf32>
    %47 = vector.shape_cast %46 : vector<1x2x256xf32> to vector<2x256xf32>
    %48 = arith.mulf %47, %39 : vector<2x256xf32>
    %49 = vector.broadcast %45 : f32 to vector<2x256xf32>
    %50 = arith.mulf %48, %49 : vector<2x256xf32>
    %51 = arith.addf %44, %50 : vector<2x256xf32>
    %c1_31 = arith.constant 1 : index
    %52 = memref.load %arg1[%c1_31] : memref<54xf32, #tpu.memory_space<smem>>
    %c0_32 = arith.constant 0 : index
    %c0_33 = arith.constant 0 : index
    %c112 = arith.constant 112 : index
    %53 = vector.load %arg4[%c0_32, %c0_33, %c112] : memref<3x2x512xf32, #tpu.memory_space<vmem>>, vector<1x2x256xf32>
    %54 = vector.shape_cast %53 : vector<1x2x256xf32> to vector<2x256xf32>
    %55 = vector.broadcast %52 : f32 to vector<2x256xf32>
    %56 = arith.mulf %54, %55 : vector<2x256xf32>
    %57 = arith.addf %51, %56 : vector<2x256xf32>
    %c2_34 = arith.constant 2 : index
    %58 = memref.load %arg1[%c2_34] : memref<54xf32, #tpu.memory_space<smem>>
    %c0_35 = arith.constant 0 : index
    %c0_36 = arith.constant 0 : index
    %c113 = arith.constant 113 : index
    %59 = vector.load %arg4[%c0_35, %c0_36, %c113] : memref<3x2x512xf32, #tpu.memory_space<vmem>>, vector<1x2x256xf32>
    %60 = vector.shape_cast %59 : vector<1x2x256xf32> to vector<2x256xf32>
    %61 = arith.mulf %60, %43 : vector<2x256xf32>
    %62 = vector.broadcast %58 : f32 to vector<2x256xf32>
    %63 = arith.mulf %61, %62 : vector<2x256xf32>
    %64 = arith.addf %57, %63 : vector<2x256xf32>
    %c3 = arith.constant 3 : index
    %65 = memref.load %arg1[%c3] : memref<54xf32, #tpu.memory_space<smem>>
    %c0_37 = arith.constant 0 : index
    %c0_38 = arith.constant 0 : index
    %c127 = arith.constant 127 : index
    %66 = vector.load %arg4[%c0_37, %c0_38, %c127] : memref<3x2x512xf32, #tpu.memory_space<vmem>>, vector<1x2x256xf32>
    %67 = vector.shape_cast %66 : vector<1x2x256xf32> to vector<2x256xf32>
    %68 = arith.mulf %67, %39 : vector<2x256xf32>
    %69 = vector.broadcast %65 : f32 to vector<2x256xf32>
    %70 = arith.mulf %68, %69 : vector<2x256xf32>
    %71 = arith.addf %64, %70 : vector<2x256xf32>
    %c4 = arith.constant 4 : index
    %72 = memref.load %arg1[%c4] : memref<54xf32, #tpu.memory_space<smem>>
    %c0_39 = arith.constant 0 : index
    %c0_40 = arith.constant 0 : index
    %c128_41 = arith.constant 128 : index
    %73 = vector.load %arg4[%c0_39, %c0_40, %c128_41] : memref<3x2x512xf32, #tpu.memory_space<vmem>>, vector<1x2x256xf32>
    %74 = vector.shape_cast %73 : vector<1x2x256xf32> to vector<2x256xf32>
    %75 = vector.broadcast %72 : f32 to vector<2x256xf32>
    %76 = arith.mulf %74, %75 : vector<2x256xf32>
    %77 = arith.addf %71, %76 : vector<2x256xf32>
    %c5 = arith.constant 5 : index
    %78 = memref.load %arg1[%c5] : memref<54xf32, #tpu.memory_space<smem>>
    %c0_42 = arith.constant 0 : index
    %c0_43 = arith.constant 0 : index
    %c129 = arith.constant 129 : index
    %79 = vector.load %arg4[%c0_42, %c0_43, %c129] : memref<3x2x512xf32, #tpu.memory_space<vmem>>, vector<1x2x256xf32>
    %80 = vector.shape_cast %79 : vector<1x2x256xf32> to vector<2x256xf32>
    %81 = arith.mulf %80, %43 : vector<2x256xf32>
    %82 = vector.broadcast %78 : f32 to vector<2x256xf32>
    %83 = arith.mulf %81, %82 : vector<2x256xf32>
    %84 = arith.addf %77, %83 : vector<2x256xf32>
    %c6 = arith.constant 6 : index
    %85 = memref.load %arg1[%c6] : memref<54xf32, #tpu.memory_space<smem>>
    %c0_44 = arith.constant 0 : index
    %c0_45 = arith.constant 0 : index
    %c143 = arith.constant 143 : index
    %86 = vector.load %arg4[%c0_44, %c0_45, %c143] : memref<3x2x512xf32, #tpu.memory_space<vmem>>, vector<1x2x256xf32>
    %87 = vector.shape_cast %86 : vector<1x2x256xf32> to vector<2x256xf32>
    %88 = arith.mulf %87, %39 : vector<2x256xf32>
    %89 = vector.broadcast %85 : f32 to vector<2x256xf32>
    %90 = arith.mulf %88, %89 : vector<2x256xf32>
    %91 = arith.addf %84, %90 : vector<2x256xf32>
    %c7 = arith.constant 7 : index
    %92 = memref.load %arg1[%c7] : memref<54xf32, #tpu.memory_space<smem>>
    %c0_46 = arith.constant 0 : index
    %c0_47 = arith.constant 0 : index
    %c144 = arith.constant 144 : index
    %93 = vector.load %arg4[%c0_46, %c0_47, %c144] : memref<3x2x512xf32, #tpu.memory_space<vmem>>, vector<1x2x256xf32>
    %94 = vector.shape_cast %93 : vector<1x2x256xf32> to vector<2x256xf32>
    %95 = vector.broadcast %92 : f32 to vector<2x256xf32>
    %96 = arith.mulf %94, %95 : vector<2x256xf32>
    %97 = arith.addf %91, %96 : vector<2x256xf32>
    %c8 = arith.constant 8 : index
    %98 = memref.load %arg1[%c8] : memref<54xf32, #tpu.memory_space<smem>>
    %c0_48 = arith.constant 0 : index
    %c0_49 = arith.constant 0 : index
    %c145 = arith.constant 145 : index
    %99 = vector.load %arg4[%c0_48, %c0_49, %c145] : memref<3x2x512xf32, #tpu.memory_space<vmem>>, vector<1x2x256xf32>
    %100 = vector.shape_cast %99 : vector<1x2x256xf32> to vector<2x256xf32>
    %101 = arith.mulf %100, %43 : vector<2x256xf32>
    %102 = vector.broadcast %98 : f32 to vector<2x256xf32>
    %103 = arith.mulf %101, %102 : vector<2x256xf32>
    %104 = arith.addf %97, %103 : vector<2x256xf32>
    %c9 = arith.constant 9 : index
    %105 = memref.load %arg1[%c9] : memref<54xf32, #tpu.memory_space<smem>>
    %c1_50 = arith.constant 1 : index
    %c0_51 = arith.constant 0 : index
    %c111_52 = arith.constant 111 : index
    %106 = vector.load %arg4[%c1_50, %c0_51, %c111_52] : memref<3x2x512xf32, #tpu.memory_space<vmem>>, vector<1x2x256xf32>
    %107 = vector.shape_cast %106 : vector<1x2x256xf32> to vector<2x256xf32>
    %108 = arith.mulf %107, %39 : vector<2x256xf32>
    %109 = vector.broadcast %105 : f32 to vector<2x256xf32>
    %110 = arith.mulf %108, %109 : vector<2x256xf32>
    %111 = arith.addf %104, %110 : vector<2x256xf32>
    %c10 = arith.constant 10 : index
    %112 = memref.load %arg1[%c10] : memref<54xf32, #tpu.memory_space<smem>>
    %c1_53 = arith.constant 1 : index
    %c0_54 = arith.constant 0 : index
    %c112_55 = arith.constant 112 : index
    %113 = vector.load %arg4[%c1_53, %c0_54, %c112_55] : memref<3x2x512xf32, #tpu.memory_space<vmem>>, vector<1x2x256xf32>
    %114 = vector.shape_cast %113 : vector<1x2x256xf32> to vector<2x256xf32>
    %115 = vector.broadcast %112 : f32 to vector<2x256xf32>
    %116 = arith.mulf %114, %115 : vector<2x256xf32>
    %117 = arith.addf %111, %116 : vector<2x256xf32>
    %c11 = arith.constant 11 : index
    %118 = memref.load %arg1[%c11] : memref<54xf32, #tpu.memory_space<smem>>
    %c1_56 = arith.constant 1 : index
    %c0_57 = arith.constant 0 : index
    %c113_58 = arith.constant 113 : index
    %119 = vector.load %arg4[%c1_56, %c0_57, %c113_58] : memref<3x2x512xf32, #tpu.memory_space<vmem>>, vector<1x2x256xf32>
    %120 = vector.shape_cast %119 : vector<1x2x256xf32> to vector<2x256xf32>
    %121 = arith.mulf %120, %43 : vector<2x256xf32>
    %122 = vector.broadcast %118 : f32 to vector<2x256xf32>
    %123 = arith.mulf %121, %122 : vector<2x256xf32>
    %124 = arith.addf %117, %123 : vector<2x256xf32>
    %c12 = arith.constant 12 : index
    %125 = memref.load %arg1[%c12] : memref<54xf32, #tpu.memory_space<smem>>
    %c1_59 = arith.constant 1 : index
    %c0_60 = arith.constant 0 : index
    %c127_61 = arith.constant 127 : index
    %126 = vector.load %arg4[%c1_59, %c0_60, %c127_61] : memref<3x2x512xf32, #tpu.memory_space<vmem>>, vector<1x2x256xf32>
    %127 = vector.shape_cast %126 : vector<1x2x256xf32> to vector<2x256xf32>
    %128 = arith.mulf %127, %39 : vector<2x256xf32>
    %129 = vector.broadcast %125 : f32 to vector<2x256xf32>
    %130 = arith.mulf %128, %129 : vector<2x256xf32>
    %131 = arith.addf %124, %130 : vector<2x256xf32>
    %c13 = arith.constant 13 : index
    %132 = memref.load %arg1[%c13] : memref<54xf32, #tpu.memory_space<smem>>
    %c1_62 = arith.constant 1 : index
    %c0_63 = arith.constant 0 : index
    %c128_64 = arith.constant 128 : index
    %133 = vector.load %arg4[%c1_62, %c0_63, %c128_64] : memref<3x2x512xf32, #tpu.memory_space<vmem>>, vector<1x2x256xf32>
    %134 = vector.shape_cast %133 : vector<1x2x256xf32> to vector<2x256xf32>
    %135 = vector.broadcast %132 : f32 to vector<2x256xf32>
    %136 = arith.mulf %134, %135 : vector<2x256xf32>
    %137 = arith.addf %131, %136 : vector<2x256xf32>
    %c14 = arith.constant 14 : index
    %138 = memref.load %arg1[%c14] : memref<54xf32, #tpu.memory_space<smem>>
    %c1_65 = arith.constant 1 : index
    %c0_66 = arith.constant 0 : index
    %c129_67 = arith.constant 129 : index
    %139 = vector.load %arg4[%c1_65, %c0_66, %c129_67] : memref<3x2x512xf32, #tpu.memory_space<vmem>>, vector<1x2x256xf32>
    %140 = vector.shape_cast %139 : vector<1x2x256xf32> to vector<2x256xf32>
    %141 = arith.mulf %140, %43 : vector<2x256xf32>
    %142 = vector.broadcast %138 : f32 to vector<2x256xf32>
    %143 = arith.mulf %141, %142 : vector<2x256xf32>
    %144 = arith.addf %137, %143 : vector<2x256xf32>
    %c15 = arith.constant 15 : index
    %145 = memref.load %arg1[%c15] : memref<54xf32, #tpu.memory_space<smem>>
    %c1_68 = arith.constant 1 : index
    %c0_69 = arith.constant 0 : index
    %c143_70 = arith.constant 143 : index
    %146 = vector.load %arg4[%c1_68, %c0_69, %c143_70] : memref<3x2x512xf32, #tpu.memory_space<vmem>>, vector<1x2x256xf32>
    %147 = vector.shape_cast %146 : vector<1x2x256xf32> to vector<2x256xf32>
    %148 = arith.mulf %147, %39 : vector<2x256xf32>
    %149 = vector.broadcast %145 : f32 to vector<2x256xf32>
    %150 = arith.mulf %148, %149 : vector<2x256xf32>
    %151 = arith.addf %144, %150 : vector<2x256xf32>
    %c16 = arith.constant 16 : index
    %152 = memref.load %arg1[%c16] : memref<54xf32, #tpu.memory_space<smem>>
    %c1_71 = arith.constant 1 : index
    %c0_72 = arith.constant 0 : index
    %c144_73 = arith.constant 144 : index
    %153 = vector.load %arg4[%c1_71, %c0_72, %c144_73] : memref<3x2x512xf32, #tpu.memory_space<vmem>>, vector<1x2x256xf32>
    %154 = vector.shape_cast %153 : vector<1x2x256xf32> to vector<2x256xf32>
    %155 = vector.broadcast %152 : f32 to vector<2x256xf32>
    %156 = arith.mulf %154, %155 : vector<2x256xf32>
    %157 = arith.addf %151, %156 : vector<2x256xf32>
    %c17 = arith.constant 17 : index
    %158 = memref.load %arg1[%c17] : memref<54xf32, #tpu.memory_space<smem>>
    %c1_74 = arith.constant 1 : index
    %c0_75 = arith.constant 0 : index
    %c145_76 = arith.constant 145 : index
    %159 = vector.load %arg4[%c1_74, %c0_75, %c145_76] : memref<3x2x512xf32, #tpu.memory_space<vmem>>, vector<1x2x256xf32>
    %160 = vector.shape_cast %159 : vector<1x2x256xf32> to vector<2x256xf32>
    %161 = arith.mulf %160, %43 : vector<2x256xf32>
    %162 = vector.broadcast %158 : f32 to vector<2x256xf32>
    %163 = arith.mulf %161, %162 : vector<2x256xf32>
    %164 = arith.addf %157, %163 : vector<2x256xf32>
    %c18 = arith.constant 18 : index
    %165 = memref.load %arg1[%c18] : memref<54xf32, #tpu.memory_space<smem>>
    %c2_77 = arith.constant 2 : index
    %c0_78 = arith.constant 0 : index
    %c111_79 = arith.constant 111 : index
    %166 = vector.load %arg4[%c2_77, %c0_78, %c111_79] : memref<3x2x512xf32, #tpu.memory_space<vmem>>, vector<1x2x256xf32>
    %167 = vector.shape_cast %166 : vector<1x2x256xf32> to vector<2x256xf32>
    %168 = arith.mulf %167, %39 : vector<2x256xf32>
    %169 = vector.broadcast %165 : f32 to vector<2x256xf32>
    %170 = arith.mulf %168, %169 : vector<2x256xf32>
    %171 = arith.addf %164, %170 : vector<2x256xf32>
    %c19 = arith.constant 19 : index
    %172 = memref.load %arg1[%c19] : memref<54xf32, #tpu.memory_space<smem>>
    %c2_80 = arith.constant 2 : index
    %c0_81 = arith.constant 0 : index
    %c112_82 = arith.constant 112 : index
    %173 = vector.load %arg4[%c2_80, %c0_81, %c112_82] : memref<3x2x512xf32, #tpu.memory_space<vmem>>, vector<1x2x256xf32>
    %174 = vector.shape_cast %173 : vector<1x2x256xf32> to vector<2x256xf32>
    %175 = vector.broadcast %172 : f32 to vector<2x256xf32>
    %176 = arith.mulf %174, %175 : vector<2x256xf32>
    %177 = arith.addf %171, %176 : vector<2x256xf32>
    %c20 = arith.constant 20 : index
    %178 = memref.load %arg1[%c20] : memref<54xf32, #tpu.memory_space<smem>>
    %c2_83 = arith.constant 2 : index
    %c0_84 = arith.constant 0 : index
    %c113_85 = arith.constant 113 : index
    %179 = vector.load %arg4[%c2_83, %c0_84, %c113_85] : memref<3x2x512xf32, #tpu.memory_space<vmem>>, vector<1x2x256xf32>
    %180 = vector.shape_cast %179 : vector<1x2x256xf32> to vector<2x256xf32>
    %181 = arith.mulf %180, %43 : vector<2x256xf32>
    %182 = vector.broadcast %178 : f32 to vector<2x256xf32>
    %183 = arith.mulf %181, %182 : vector<2x256xf32>
    %184 = arith.addf %177, %183 : vector<2x256xf32>
    %c21 = arith.constant 21 : index
    %185 = memref.load %arg1[%c21] : memref<54xf32, #tpu.memory_space<smem>>
    %c2_86 = arith.constant 2 : index
    %c0_87 = arith.constant 0 : index
    %c127_88 = arith.constant 127 : index
    %186 = vector.load %arg4[%c2_86, %c0_87, %c127_88] : memref<3x2x512xf32, #tpu.memory_space<vmem>>, vector<1x2x256xf32>
    %187 = vector.shape_cast %186 : vector<1x2x256xf32> to vector<2x256xf32>
    %188 = arith.mulf %187, %39 : vector<2x256xf32>
    %189 = vector.broadcast %185 : f32 to vector<2x256xf32>
    %190 = arith.mulf %188, %189 : vector<2x256xf32>
    %191 = arith.addf %184, %190 : vector<2x256xf32>
    %c22 = arith.constant 22 : index
    %192 = memref.load %arg1[%c22] : memref<54xf32, #tpu.memory_space<smem>>
    %c2_89 = arith.constant 2 : index
    %c0_90 = arith.constant 0 : index
    %c128_91 = arith.constant 128 : index
    %193 = vector.load %arg4[%c2_89, %c0_90, %c128_91] : memref<3x2x512xf32, #tpu.memory_space<vmem>>, vector<1x2x256xf32>
    %194 = vector.shape_cast %193 : vector<1x2x256xf32> to vector<2x256xf32>
    %195 = vector.broadcast %192 : f32 to vector<2x256xf32>
    %196 = arith.mulf %194, %195 : vector<2x256xf32>
    %197 = arith.addf %191, %196 : vector<2x256xf32>
    %c23 = arith.constant 23 : index
    %198 = memref.load %arg1[%c23] : memref<54xf32, #tpu.memory_space<smem>>
    %c2_92 = arith.constant 2 : index
    %c0_93 = arith.constant 0 : index
    %c129_94 = arith.constant 129 : index
    %199 = vector.load %arg4[%c2_92, %c0_93, %c129_94] : memref<3x2x512xf32, #tpu.memory_space<vmem>>, vector<1x2x256xf32>
    %200 = vector.shape_cast %199 : vector<1x2x256xf32> to vector<2x256xf32>
    %201 = arith.mulf %200, %43 : vector<2x256xf32>
    %202 = vector.broadcast %198 : f32 to vector<2x256xf32>
    %203 = arith.mulf %201, %202 : vector<2x256xf32>
    %204 = arith.addf %197, %203 : vector<2x256xf32>
    %c24 = arith.constant 24 : index
    %205 = memref.load %arg1[%c24] : memref<54xf32, #tpu.memory_space<smem>>
    %c2_95 = arith.constant 2 : index
    %c0_96 = arith.constant 0 : index
    %c143_97 = arith.constant 143 : index
    %206 = vector.load %arg4[%c2_95, %c0_96, %c143_97] : memref<3x2x512xf32, #tpu.memory_space<vmem>>, vector<1x2x256xf32>
    %207 = vector.shape_cast %206 : vector<1x2x256xf32> to vector<2x256xf32>
    %208 = arith.mulf %207, %39 : vector<2x256xf32>
    %209 = vector.broadcast %205 : f32 to vector<2x256xf32>
    %210 = arith.mulf %208, %209 : vector<2x256xf32>
    %211 = arith.addf %204, %210 : vector<2x256xf32>
    %c25 = arith.constant 25 : index
    %212 = memref.load %arg1[%c25] : memref<54xf32, #tpu.memory_space<smem>>
    %c2_98 = arith.constant 2 : index
    %c0_99 = arith.constant 0 : index
    %c144_100 = arith.constant 144 : index
    %213 = vector.load %arg4[%c2_98, %c0_99, %c144_100] : memref<3x2x512xf32, #tpu.memory_space<vmem>>, vector<1x2x256xf32>
    %214 = vector.shape_cast %213 : vector<1x2x256xf32> to vector<2x256xf32>
    %215 = vector.broadcast %212 : f32 to vector<2x256xf32>
    %216 = arith.mulf %214, %215 : vector<2x256xf32>
    %217 = arith.addf %211, %216 : vector<2x256xf32>
    %c26 = arith.constant 26 : index
    %218 = memref.load %arg1[%c26] : memref<54xf32, #tpu.memory_space<smem>>
    %c2_101 = arith.constant 2 : index
    %c0_102 = arith.constant 0 : index
    %c145_103 = arith.constant 145 : index
    %219 = vector.load %arg4[%c2_101, %c0_102, %c145_103] : memref<3x2x512xf32, #tpu.memory_space<vmem>>, vector<1x2x256xf32>
    %220 = vector.shape_cast %219 : vector<1x2x256xf32> to vector<2x256xf32>
    %221 = arith.mulf %220, %43 : vector<2x256xf32>
    %222 = vector.broadcast %218 : f32 to vector<2x256xf32>
    %223 = arith.mulf %221, %222 : vector<2x256xf32>
    %224 = arith.addf %217, %223 : vector<2x256xf32>
    %c0_104 = arith.constant 0 : index
    %225 = memref.load %arg2[%c0_104] : memref<2xf32, #tpu.memory_space<smem>>
    %226 = vector.broadcast %225 : f32 to vector<2x256xf32>
    %227 = arith.addf %224, %226 : vector<2x256xf32>
    %228 = vector.shape_cast %227 : vector<2x256xf32> to vector<1x2x256xf32>
    %cst_105 = arith.constant dense<0x7F800000> : vector<1xf32>
    %229 = vector.multi_reduction <minimumf>, %228, %cst_105 [1, 2] : vector<1x2x256xf32> to vector<1xf32>
    %230 = vector.shape_cast %229 : vector<1xf32> to vector<1x1x1xf32>
    %231 = vector.extract %230[0, 0, 0] : f32 from vector<1x1x1xf32>
    %232 = vector.broadcast %231 : f32 to vector<1x1xf32>
    %233 = vector.shape_cast %227 : vector<2x256xf32> to vector<1x2x256xf32>
    %cst_106 = arith.constant dense<0xFF800000> : vector<1xf32>
    %234 = vector.multi_reduction <maximumf>, %233, %cst_106 [1, 2] : vector<1x2x256xf32> to vector<1xf32>
    %235 = vector.shape_cast %234 : vector<1xf32> to vector<1x1x1xf32>
    %236 = vector.extract %235[0, 0, 0] : f32 from vector<1x1x1xf32>
    %237 = vector.broadcast %236 : f32 to vector<1x1xf32>
    %cst_107 = arith.constant 1.000000e+00 : f32
    %238 = vector.broadcast %cst_107 : f32 to vector<1x1xf32>
    %239 = arith.divf %238, %237 : vector<1x1xf32>
    %240 = vector.broadcast %232 : vector<1x1xf32> to vector<2x256xf32>
    %241 = arith.subf %227, %240 : vector<2x256xf32>
    %242 = vector.broadcast %239 : vector<1x1xf32> to vector<2x256xf32>
    %243 = arith.mulf %241, %242 : vector<2x256xf32>
    %c0_108 = arith.constant 0 : index
    %c3_109 = arith.constant 3 : index
    %c0_110 = arith.constant 0 : index
    %244 = vector.load %arg3[%c0_108, %c3_109, %c0_110] : memref<2x5x256xf32, #tpu.memory_space<vmem>>, vector<2x1x256xf32>
    %245 = vector.shape_cast %244 : vector<2x1x256xf32> to vector<2x256xf32>
    %246 = vector.shape_cast %243 : vector<2x256xf32> to vector<2x1x256xf32>
    tpu.vector_store %arg3[%c0_108, %c3_109, %c0_110], %246 {strides = array<i32>} : memref<2x5x256xf32, #tpu.memory_space<vmem>>, vector<2x1x256xf32>,
    %cst_111 = arith.constant 0.000000e+00 : f32
    %247 = vector.broadcast %cst_111 : f32 to vector<2x256xf32>
    %c27 = arith.constant 27 : index
    %248 = memref.load %arg1[%c27] : memref<54xf32, #tpu.memory_space<smem>>
    %c0_112 = arith.constant 0 : index
    %c0_113 = arith.constant 0 : index
    %c111_114 = arith.constant 111 : index
    %249 = vector.load %arg4[%c0_112, %c0_113, %c111_114] : memref<3x2x512xf32, #tpu.memory_space<vmem>>, vector<1x2x256xf32>
    %250 = vector.shape_cast %249 : vector<1x2x256xf32> to vector<2x256xf32>
    %251 = arith.mulf %250, %39 : vector<2x256xf32>
    %252 = vector.broadcast %248 : f32 to vector<2x256xf32>
    %253 = arith.mulf %251, %252 : vector<2x256xf32>
    %254 = arith.addf %247, %253 : vector<2x256xf32>
    %c28 = arith.constant 28 : index
    %255 = memref.load %arg1[%c28] : memref<54xf32, #tpu.memory_space<smem>>
    %c0_115 = arith.constant 0 : index
    %c0_116 = arith.constant 0 : index
    %c112_117 = arith.constant 112 : index
    %256 = vector.load %arg4[%c0_115, %c0_116, %c112_117] : memref<3x2x512xf32, #tpu.memory_space<vmem>>, vector<1x2x256xf32>
    %257 = vector.shape_cast %256 : vector<1x2x256xf32> to vector<2x256xf32>
    %258 = vector.broadcast %255 : f32 to vector<2x256xf32>
    %259 = arith.mulf %257, %258 : vector<2x256xf32>
    %260 = arith.addf %254, %259 : vector<2x256xf32>
    %c29 = arith.constant 29 : index
    %261 = memref.load %arg1[%c29] : memref<54xf32, #tpu.memory_space<smem>>
    %c0_118 = arith.constant 0 : index
    %c0_119 = arith.constant 0 : index
    %c113_120 = arith.constant 113 : index
    %262 = vector.load %arg4[%c0_118, %c0_119, %c113_120] : memref<3x2x512xf32, #tpu.memory_space<vmem>>, vector<1x2x256xf32>
    %263 = vector.shape_cast %262 : vector<1x2x256xf32> to vector<2x256xf32>
    %264 = arith.mulf %263, %43 : vector<2x256xf32>
    %265 = vector.broadcast %261 : f32 to vector<2x256xf32>
    %266 = arith.mulf %264, %265 : vector<2x256xf32>
    %267 = arith.addf %260, %266 : vector<2x256xf32>
    %c30 = arith.constant 30 : index
    %268 = memref.load %arg1[%c30] : memref<54xf32, #tpu.memory_space<smem>>
    %c0_121 = arith.constant 0 : index
    %c0_122 = arith.constant 0 : index
    %c127_123 = arith.constant 127 : index
    %269 = vector.load %arg4[%c0_121, %c0_122, %c127_123] : memref<3x2x512xf32, #tpu.memory_space<vmem>>, vector<1x2x256xf32>
    %270 = vector.shape_cast %269 : vector<1x2x256xf32> to vector<2x256xf32>
    %271 = arith.mulf %270, %39 : vector<2x256xf32>
    %272 = vector.broadcast %268 : f32 to vector<2x256xf32>
    %273 = arith.mulf %271, %272 : vector<2x256xf32>
    %274 = arith.addf %267, %273 : vector<2x256xf32>
    %c31 = arith.constant 31 : index
    %275 = memref.load %arg1[%c31] : memref<54xf32, #tpu.memory_space<smem>>
    %c0_124 = arith.constant 0 : index
    %c0_125 = arith.constant 0 : index
    %c128_126 = arith.constant 128 : index
    %276 = vector.load %arg4[%c0_124, %c0_125, %c128_126] : memref<3x2x512xf32, #tpu.memory_space<vmem>>, vector<1x2x256xf32>
    %277 = vector.shape_cast %276 : vector<1x2x256xf32> to vector<2x256xf32>
    %278 = vector.broadcast %275 : f32 to vector<2x256xf32>
    %279 = arith.mulf %277, %278 : vector<2x256xf32>
    %280 = arith.addf %274, %279 : vector<2x256xf32>
    %c32 = arith.constant 32 : index
    %281 = memref.load %arg1[%c32] : memref<54xf32, #tpu.memory_space<smem>>
    %c0_127 = arith.constant 0 : index
    %c0_128 = arith.constant 0 : index
    %c129_129 = arith.constant 129 : index
    %282 = vector.load %arg4[%c0_127, %c0_128, %c129_129] : memref<3x2x512xf32, #tpu.memory_space<vmem>>, vector<1x2x256xf32>
    %283 = vector.shape_cast %282 : vector<1x2x256xf32> to vector<2x256xf32>
    %284 = arith.mulf %283, %43 : vector<2x256xf32>
    %285 = vector.broadcast %281 : f32 to vector<2x256xf32>
    %286 = arith.mulf %284, %285 : vector<2x256xf32>
    %287 = arith.addf %280, %286 : vector<2x256xf32>
    %c33 = arith.constant 33 : index
    %288 = memref.load %arg1[%c33] : memref<54xf32, #tpu.memory_space<smem>>
    %c0_130 = arith.constant 0 : index
    %c0_131 = arith.constant 0 : index
    %c143_132 = arith.constant 143 : index
    %289 = vector.load %arg4[%c0_130, %c0_131, %c143_132] : memref<3x2x512xf32, #tpu.memory_space<vmem>>, vector<1x2x256xf32>
    %290 = vector.shape_cast %289 : vector<1x2x256xf32> to vector<2x256xf32>
    %291 = arith.mulf %290, %39 : vector<2x256xf32>
    %292 = vector.broadcast %288 : f32 to vector<2x256xf32>
    %293 = arith.mulf %291, %292 : vector<2x256xf32>
    %294 = arith.addf %287, %293 : vector<2x256xf32>
    %c34 = arith.constant 34 : index
    %295 = memref.load %arg1[%c34] : memref<54xf32, #tpu.memory_space<smem>>
    %c0_133 = arith.constant 0 : index
    %c0_134 = arith.constant 0 : index
    %c144_135 = arith.constant 144 : index
    %296 = vector.load %arg4[%c0_133, %c0_134, %c144_135] : memref<3x2x512xf32, #tpu.memory_space<vmem>>, vector<1x2x256xf32>
    %297 = vector.shape_cast %296 : vector<1x2x256xf32> to vector<2x256xf32>
    %298 = vector.broadcast %295 : f32 to vector<2x256xf32>
    %299 = arith.mulf %297, %298 : vector<2x256xf32>
    %300 = arith.addf %294, %299 : vector<2x256xf32>
    %c35 = arith.constant 35 : index
    %301 = memref.load %arg1[%c35] : memref<54xf32, #tpu.memory_space<smem>>
    %c0_136 = arith.constant 0 : index
    %c0_137 = arith.constant 0 : index
    %c145_138 = arith.constant 145 : index
    %302 = vector.load %arg4[%c0_136, %c0_137, %c145_138] : memref<3x2x512xf32, #tpu.memory_space<vmem>>, vector<1x2x256xf32>
    %303 = vector.shape_cast %302 : vector<1x2x256xf32> to vector<2x256xf32>
    %304 = arith.mulf %303, %43 : vector<2x256xf32>
    %305 = vector.broadcast %301 : f32 to vector<2x256xf32>
    %306 = arith.mulf %304, %305 : vector<2x256xf32>
    %307 = arith.addf %300, %306 : vector<2x256xf32>
    %c36 = arith.constant 36 : index
    %308 = memref.load %arg1[%c36] : memref<54xf32, #tpu.memory_space<smem>>
    %c1_139 = arith.constant 1 : index
    %c0_140 = arith.constant 0 : index
    %c111_141 = arith.constant 111 : index
    %309 = vector.load %arg4[%c1_139, %c0_140, %c111_141] : memref<3x2x512xf32, #tpu.memory_space<vmem>>, vector<1x2x256xf32>
    %310 = vector.shape_cast %309 : vector<1x2x256xf32> to vector<2x256xf32>
    %311 = arith.mulf %310, %39 : vector<2x256xf32>
    %312 = vector.broadcast %308 : f32 to vector<2x256xf32>
    %313 = arith.mulf %311, %312 : vector<2x256xf32>
    %314 = arith.addf %307, %313 : vector<2x256xf32>
    %c37 = arith.constant 37 : index
    %315 = memref.load %arg1[%c37] : memref<54xf32, #tpu.memory_space<smem>>
    %c1_142 = arith.constant 1 : index
    %c0_143 = arith.constant 0 : index
    %c112_144 = arith.constant 112 : index
    %316 = vector.load %arg4[%c1_142, %c0_143, %c112_144] : memref<3x2x512xf32, #tpu.memory_space<vmem>>, vector<1x2x256xf32>
    %317 = vector.shape_cast %316 : vector<1x2x256xf32> to vector<2x256xf32>
    %318 = vector.broadcast %315 : f32 to vector<2x256xf32>
    %319 = arith.mulf %317, %318 : vector<2x256xf32>
    %320 = arith.addf %314, %319 : vector<2x256xf32>
    %c38 = arith.constant 38 : index
    %321 = memref.load %arg1[%c38] : memref<54xf32, #tpu.memory_space<smem>>
    %c1_145 = arith.constant 1 : index
    %c0_146 = arith.constant 0 : index
    %c113_147 = arith.constant 113 : index
    %322 = vector.load %arg4[%c1_145, %c0_146, %c113_147] : memref<3x2x512xf32, #tpu.memory_space<vmem>>, vector<1x2x256xf32>
    %323 = vector.shape_cast %322 : vector<1x2x256xf32> to vector<2x256xf32>
    %324 = arith.mulf %323, %43 : vector<2x256xf32>
    %325 = vector.broadcast %321 : f32 to vector<2x256xf32>
    %326 = arith.mulf %324, %325 : vector<2x256xf32>
    %327 = arith.addf %320, %326 : vector<2x256xf32>
    %c39 = arith.constant 39 : index
    %328 = memref.load %arg1[%c39] : memref<54xf32, #tpu.memory_space<smem>>
    %c1_148 = arith.constant 1 : index
    %c0_149 = arith.constant 0 : index
    %c127_150 = arith.constant 127 : index
    %329 = vector.load %arg4[%c1_148, %c0_149, %c127_150] : memref<3x2x512xf32, #tpu.memory_space<vmem>>, vector<1x2x256xf32>
    %330 = vector.shape_cast %329 : vector<1x2x256xf32> to vector<2x256xf32>
    %331 = arith.mulf %330, %39 : vector<2x256xf32>
    %332 = vector.broadcast %328 : f32 to vector<2x256xf32>
    %333 = arith.mulf %331, %332 : vector<2x256xf32>
    %334 = arith.addf %327, %333 : vector<2x256xf32>
    %c40 = arith.constant 40 : index
    %335 = memref.load %arg1[%c40] : memref<54xf32, #tpu.memory_space<smem>>
    %c1_151 = arith.constant 1 : index
    %c0_152 = arith.constant 0 : index
    %c128_153 = arith.constant 128 : index
    %336 = vector.load %arg4[%c1_151, %c0_152, %c128_153] : memref<3x2x512xf32, #tpu.memory_space<vmem>>, vector<1x2x256xf32>
    %337 = vector.shape_cast %336 : vector<1x2x256xf32> to vector<2x256xf32>
    %338 = vector.broadcast %335 : f32 to vector<2x256xf32>
    %339 = arith.mulf %337, %338 : vector<2x256xf32>
    %340 = arith.addf %334, %339 : vector<2x256xf32>
    %c41 = arith.constant 41 : index
    %341 = memref.load %arg1[%c41] : memref<54xf32, #tpu.memory_space<smem>>
    %c1_154 = arith.constant 1 : index
    %c0_155 = arith.constant 0 : index
    %c129_156 = arith.constant 129 : index
    %342 = vector.load %arg4[%c1_154, %c0_155, %c129_156] : memref<3x2x512xf32, #tpu.memory_space<vmem>>, vector<1x2x256xf32>
    %343 = vector.shape_cast %342 : vector<1x2x256xf32> to vector<2x256xf32>
    %344 = arith.mulf %343, %43 : vector<2x256xf32>
    %345 = vector.broadcast %341 : f32 to vector<2x256xf32>
    %346 = arith.mulf %344, %345 : vector<2x256xf32>
    %347 = arith.addf %340, %346 : vector<2x256xf32>
    %c42 = arith.constant 42 : index
    %348 = memref.load %arg1[%c42] : memref<54xf32, #tpu.memory_space<smem>>
    %c1_157 = arith.constant 1 : index
    %c0_158 = arith.constant 0 : index
    %c143_159 = arith.constant 143 : index
    %349 = vector.load %arg4[%c1_157, %c0_158, %c143_159] : memref<3x2x512xf32, #tpu.memory_space<vmem>>, vector<1x2x256xf32>
    %350 = vector.shape_cast %349 : vector<1x2x256xf32> to vector<2x256xf32>
    %351 = arith.mulf %350, %39 : vector<2x256xf32>
    %352 = vector.broadcast %348 : f32 to vector<2x256xf32>
    %353 = arith.mulf %351, %352 : vector<2x256xf32>
    %354 = arith.addf %347, %353 : vector<2x256xf32>
    %c43 = arith.constant 43 : index
    %355 = memref.load %arg1[%c43] : memref<54xf32, #tpu.memory_space<smem>>
    %c1_160 = arith.constant 1 : index
    %c0_161 = arith.constant 0 : index
    %c144_162 = arith.constant 144 : index
    %356 = vector.load %arg4[%c1_160, %c0_161, %c144_162] : memref<3x2x512xf32, #tpu.memory_space<vmem>>, vector<1x2x256xf32>
    %357 = vector.shape_cast %356 : vector<1x2x256xf32> to vector<2x256xf32>
    %358 = vector.broadcast %355 : f32 to vector<2x256xf32>
    %359 = arith.mulf %357, %358 : vector<2x256xf32>
    %360 = arith.addf %354, %359 : vector<2x256xf32>
    %c44 = arith.constant 44 : index
    %361 = memref.load %arg1[%c44] : memref<54xf32, #tpu.memory_space<smem>>
    %c1_163 = arith.constant 1 : index
    %c0_164 = arith.constant 0 : index
    %c145_165 = arith.constant 145 : index
    %362 = vector.load %arg4[%c1_163, %c0_164, %c145_165] : memref<3x2x512xf32, #tpu.memory_space<vmem>>, vector<1x2x256xf32>
    %363 = vector.shape_cast %362 : vector<1x2x256xf32> to vector<2x256xf32>
    %364 = arith.mulf %363, %43 : vector<2x256xf32>
    %365 = vector.broadcast %361 : f32 to vector<2x256xf32>
    %366 = arith.mulf %364, %365 : vector<2x256xf32>
    %367 = arith.addf %360, %366 : vector<2x256xf32>
    %c45 = arith.constant 45 : index
    %368 = memref.load %arg1[%c45] : memref<54xf32, #tpu.memory_space<smem>>
    %c2_166 = arith.constant 2 : index
    %c0_167 = arith.constant 0 : index
    %c111_168 = arith.constant 111 : index
    %369 = vector.load %arg4[%c2_166, %c0_167, %c111_168] : memref<3x2x512xf32, #tpu.memory_space<vmem>>, vector<1x2x256xf32>
    %370 = vector.shape_cast %369 : vector<1x2x256xf32> to vector<2x256xf32>
    %371 = arith.mulf %370, %39 : vector<2x256xf32>
    %372 = vector.broadcast %368 : f32 to vector<2x256xf32>
    %373 = arith.mulf %371, %372 : vector<2x256xf32>
    %374 = arith.addf %367, %373 : vector<2x256xf32>
    %c46 = arith.constant 46 : index
    %375 = memref.load %arg1[%c46] : memref<54xf32, #tpu.memory_space<smem>>
    %c2_169 = arith.constant 2 : index
    %c0_170 = arith.constant 0 : index
    %c112_171 = arith.constant 112 : index
    %376 = vector.load %arg4[%c2_169, %c0_170, %c112_171] : memref<3x2x512xf32, #tpu.memory_space<vmem>>, vector<1x2x256xf32>
    %377 = vector.shape_cast %376 : vector<1x2x256xf32> to vector<2x256xf32>
    %378 = vector.broadcast %375 : f32 to vector<2x256xf32>
    %379 = arith.mulf %377, %378 : vector<2x256xf32>
    %380 = arith.addf %374, %379 : vector<2x256xf32>
    %c47 = arith.constant 47 : index
    %381 = memref.load %arg1[%c47] : memref<54xf32, #tpu.memory_space<smem>>
    %c2_172 = arith.constant 2 : index
    %c0_173 = arith.constant 0 : index
    %c113_174 = arith.constant 113 : index
    %382 = vector.load %arg4[%c2_172, %c0_173, %c113_174] : memref<3x2x512xf32, #tpu.memory_space<vmem>>, vector<1x2x256xf32>
    %383 = vector.shape_cast %382 : vector<1x2x256xf32> to vector<2x256xf32>
    %384 = arith.mulf %383, %43 : vector<2x256xf32>
    %385 = vector.broadcast %381 : f32 to vector<2x256xf32>
    %386 = arith.mulf %384, %385 : vector<2x256xf32>
    %387 = arith.addf %380, %386 : vector<2x256xf32>
    %c48 = arith.constant 48 : index
    %388 = memref.load %arg1[%c48] : memref<54xf32, #tpu.memory_space<smem>>
    %c2_175 = arith.constant 2 : index
    %c0_176 = arith.constant 0 : index
    %c127_177 = arith.constant 127 : index
    %389 = vector.load %arg4[%c2_175, %c0_176, %c127_177] : memref<3x2x512xf32, #tpu.memory_space<vmem>>, vector<1x2x256xf32>
    %390 = vector.shape_cast %389 : vector<1x2x256xf32> to vector<2x256xf32>
    %391 = arith.mulf %390, %39 : vector<2x256xf32>
    %392 = vector.broadcast %388 : f32 to vector<2x256xf32>
    %393 = arith.mulf %391, %392 : vector<2x256xf32>
    %394 = arith.addf %387, %393 : vector<2x256xf32>
    %c49 = arith.constant 49 : index
    %395 = memref.load %arg1[%c49] : memref<54xf32, #tpu.memory_space<smem>>
    %c2_178 = arith.constant 2 : index
    %c0_179 = arith.constant 0 : index
    %c128_180 = arith.constant 128 : index
    %396 = vector.load %arg4[%c2_178, %c0_179, %c128_180] : memref<3x2x512xf32, #tpu.memory_space<vmem>>, vector<1x2x256xf32>
    %397 = vector.shape_cast %396 : vector<1x2x256xf32> to vector<2x256xf32>
    %398 = vector.broadcast %395 : f32 to vector<2x256xf32>
    %399 = arith.mulf %397, %398 : vector<2x256xf32>
    %400 = arith.addf %394, %399 : vector<2x256xf32>
    %c50 = arith.constant 50 : index
    %401 = memref.load %arg1[%c50] : memref<54xf32, #tpu.memory_space<smem>>
    %c2_181 = arith.constant 2 : index
    %c0_182 = arith.constant 0 : index
    %c129_183 = arith.constant 129 : index
    %402 = vector.load %arg4[%c2_181, %c0_182, %c129_183] : memref<3x2x512xf32, #tpu.memory_space<vmem>>, vector<1x2x256xf32>
    %403 = vector.shape_cast %402 : vector<1x2x256xf32> to vector<2x256xf32>
    %404 = arith.mulf %403, %43 : vector<2x256xf32>
    %405 = vector.broadcast %401 : f32 to vector<2x256xf32>
    %406 = arith.mulf %404, %405 : vector<2x256xf32>
    %407 = arith.addf %400, %406 : vector<2x256xf32>
    %c51 = arith.constant 51 : index
    %408 = memref.load %arg1[%c51] : memref<54xf32, #tpu.memory_space<smem>>
    %c2_184 = arith.constant 2 : index
    %c0_185 = arith.constant 0 : index
    %c143_186 = arith.constant 143 : index
    %409 = vector.load %arg4[%c2_184, %c0_185, %c143_186] : memref<3x2x512xf32, #tpu.memory_space<vmem>>, vector<1x2x256xf32>
    %410 = vector.shape_cast %409 : vector<1x2x256xf32> to vector<2x256xf32>
    %411 = arith.mulf %410, %39 : vector<2x256xf32>
    %412 = vector.broadcast %408 : f32 to vector<2x256xf32>
    %413 = arith.mulf %411, %412 : vector<2x256xf32>
    %414 = arith.addf %407, %413 : vector<2x256xf32>
    %c52 = arith.constant 52 : index
    %415 = memref.load %arg1[%c52] : memref<54xf32, #tpu.memory_space<smem>>
    %c2_187 = arith.constant 2 : index
    %c0_188 = arith.constant 0 : index
    %c144_189 = arith.constant 144 : index
    %416 = vector.load %arg4[%c2_187, %c0_188, %c144_189] : memref<3x2x512xf32, #tpu.memory_space<vmem>>, vector<1x2x256xf32>
    %417 = vector.shape_cast %416 : vector<1x2x256xf32> to vector<2x256xf32>
    %418 = vector.broadcast %415 : f32 to vector<2x256xf32>
    %419 = arith.mulf %417, %418 : vector<2x256xf32>
    %420 = arith.addf %414, %419 : vector<2x256xf32>
    %c53 = arith.constant 53 : index
    %421 = memref.load %arg1[%c53] : memref<54xf32, #tpu.memory_space<smem>>
    %c2_190 = arith.constant 2 : index
    %c0_191 = arith.constant 0 : index
    %c145_192 = arith.constant 145 : index
    %422 = vector.load %arg4[%c2_190, %c0_191, %c145_192] : memref<3x2x512xf32, #tpu.memory_space<vmem>>, vector<1x2x256xf32>
    %423 = vector.shape_cast %422 : vector<1x2x256xf32> to vector<2x256xf32>
    %424 = arith.mulf %423, %43 : vector<2x256xf32>
    %425 = vector.broadcast %421 : f32 to vector<2x256xf32>
    %426 = arith.mulf %424, %425 : vector<2x256xf32>
    %427 = arith.addf %420, %426 : vector<2x256xf32>
    %c1_193 = arith.constant 1 : index
    %428 = memref.load %arg2[%c1_193] : memref<2xf32, #tpu.memory_space<smem>>
    %429 = vector.broadcast %428 : f32 to vector<2x256xf32>
    %430 = arith.addf %427, %429 : vector<2x256xf32>
    %431 = vector.shape_cast %430 : vector<2x256xf32> to vector<1x2x256xf32>
    %cst_194 = arith.constant dense<0x7F800000> : vector<1xf32>
    %432 = vector.multi_reduction <minimumf>, %431, %cst_194 [1, 2] : vector<1x2x256xf32> to vector<1xf32>
    %433 = vector.shape_cast %432 : vector<1xf32> to vector<1x1x1xf32>
    %434 = vector.extract %433[0, 0, 0] : f32 from vector<1x1x1xf32>
    %435 = vector.broadcast %434 : f32 to vector<1x1xf32>
    %436 = vector.shape_cast %430 : vector<2x256xf32> to vector<1x2x256xf32>
    %cst_195 = arith.constant dense<0xFF800000> : vector<1xf32>
    %437 = vector.multi_reduction <maximumf>, %436, %cst_195 [1, 2] : vector<1x2x256xf32> to vector<1xf32>
    %438 = vector.shape_cast %437 : vector<1xf32> to vector<1x1x1xf32>
    %439 = vector.extract %438[0, 0, 0] : f32 from vector<1x1x1xf32>
    %440 = vector.broadcast %439 : f32 to vector<1x1xf32>
    %cst_196 = arith.constant 1.000000e+00 : f32
    %441 = vector.broadcast %cst_196 : f32 to vector<1x1xf32>
    %442 = arith.divf %441, %440 : vector<1x1xf32>
    %443 = vector.broadcast %435 : vector<1x1xf32> to vector<2x256xf32>
    %444 = arith.subf %430, %443 : vector<2x256xf32>
    %445 = vector.broadcast %442 : vector<1x1xf32> to vector<2x256xf32>
    %446 = arith.mulf %444, %445 : vector<2x256xf32>
    %c0_197 = arith.constant 0 : index
    %c4_198 = arith.constant 4 : index
    %c0_199 = arith.constant 0 : index
    %447 = vector.load %arg3[%c0_197, %c4_198, %c0_199] : memref<2x5x256xf32, #tpu.memory_space<vmem>>, vector<2x1x256xf32>
    %448 = vector.shape_cast %447 : vector<2x1x256xf32> to vector<2x256xf32>
    %449 = vector.shape_cast %446 : vector<2x256xf32> to vector<2x1x256xf32>
    tpu.vector_store %arg3[%c0_197, %c4_198, %c0_199], %449 {strides = array<i32>} : memref<2x5x256xf32, #tpu.memory_space<vmem>>, vector<2x1x256xf32>,
    return
  }
}

</mosaic_0001>

<bundles_post_ra>
// kernel: tpu_custom_call.1
= control target key start
LH: loop header
LB: loop body
LE: loop exit
PB: predicated region body
PF: predicated region fallthrough
CT: control target
= control target key end

     0   :  { %8 = vsyncpa [#allocation4], 0  ;;  %s1523_s0 = inlined_call_operand.vmem [shape: f32[2,3,256], index: 0, kind: input, shape index: {}]   ;;  %s1524_s1 = inlined_call_operand.vmem [shape: f32[54], index: 1, kind: input, shape index: {}]   ;;  %s1525_s2 = inlined_call_operand.vmem [shape: f32[2], index: 2, kind: input, shape index: {}]   ;;  %s1526_s3 = inlined_call_operand.vmem [shape: f32[2,5,256], index: 3, kind: output, shape index: {}]  }
   0x1   :  { %s18_s14 = sshll.u32 %s1524_s1, 4  ;;  %s19_s14 = int_to_ptr.vmem [resolvable:$true] %s18_s14 }
   0x2   :  { %9 = vsyncpa [#allocation6], 0  ;;  %s28_s17 = sshll.u32 %s1525_s2, 4  ;;  %s1064_s18 = scalar_lea.vmem %s19_s14, 16  ;;  %s29_s17 = int_to_ptr.vmem [resolvable:$true] %s28_s17 }
   0x3   :  { %p1065_p0 = scmp.ne.s32.totalorder %s19_s14, %s1064_s18  ;;  %p1069_p1 = scmp.lt.s32.totalorder %s19_s14, %s19_s14 }
   0x4   :  { %p1070_p2 = scmp.lt.s32.totalorder %s1064_s18, %s1064_s18 }
   0x6   :  { %p1071_p3 = por %p1070_p2, %p1069_p1 }
   0x8   :  { %p1072_p4 = pnand %p1071_p3, %p1065_p0 }
   0xa   :  { %1075 = shalt.err (!%p1072_p4)
}
   0xb   :  { %s1092_s19 = smov [#allocation3]   ;;  %s1076_s20 = scalar_lea.vmem %s29_s17, 16 }
   0xc   :  { %21 = dma.vmem_to_smem %s19_s14, 16, %s1092_s19, [#allocation4]  }
   0xd   :  { %p1077_p5 = scmp.ne.s32.totalorder %s29_s17, %s1076_s20  ;;  %p1081_p6 = scmp.lt.s32.totalorder %s29_s17, %s29_s17 }
   0xe   :  { %p1082_p7 = scmp.lt.s32.totalorder %s1076_s20, %s1076_s20 }
  0x10   :  { %p1083_p8 = por %p1082_p7, %p1081_p6 }
  0x12   :  { %p1084_p9 = pnand %p1083_p8, %p1077_p5 }
  0x14   :  { %1087 = shalt.err (!%p1084_p9)
}
  0x15   :  { %s1093_s1 = smov [#allocation5]  }
  0x16   :  { %31 = dma.vmem_to_smem %s29_s17, 16, %s1093_s1, [#allocation6]  }
  0x17   :  { %1088 = dma.done.wait [#allocation4], 16  }
  0x18   :  { %1089 = vsyncadd [#allocation4], 4294967280 }
  0x19   :  { %1090 = dma.done.wait [#allocation6], 16  }
  0x1a   :  { %1091 = vsyncadd [#allocation6], 4294967280 }
  0x1b   :  { %38 = sfence }
  0x1c   :  { %v103_v0 = vlaneseq  ;;  %v1094_v1 = vmov 1983009808   ;;  %v1095_v3 = vmov 0.0   ;;  %v54_v4 = vld [vmem:[%s1523_s0] ss:$4 sm:$0x3] }
  0x1d   :  { %v148_v2 = vunpack.c.l.s4 %v1094_v1  ;;  %51 = vst [vmem:[#allocation2] sm:$0xff] %v1095_v3  ;;  %52 = vst [vmem:[#allocation2 + $0x8] sm:$0xff] %v1095_v3  ;;  %v963_v6 = vld [vmem:[%s1523_s0 + $0x8] ss:$4 sm:$0x3]  ;;  %s1148_s26 = sld [smem:[#allocation3 + $0x1c]] }
  0x1e   :  { %53 = vst [vmem:[#allocation2 + $0x10] sm:$0xff] %v1095_v3  ;;  %v104_v5 = vand.u32 127, %v103_v0  ;;  %v59_v7 = vcombine.low %v54_v4, %v963_v6  ;;  %v1143_v11 = vshrl.u32 %v103_v0, 7  ;;  %v965_v12 = vld [vmem:[%s1523_s0 + $0x1] ss:$4 sm:$0x3] }
  0x1f   :  { %v149_v10 = vunpack.c.0.s8 %v148_v2  ;;  %v966_v16 = vld [vmem:[%s1523_s0 + $0x9] ss:$4 sm:$0x3]  ;;  %s975_s29 = sld [smem:[#allocation3 + $0x1]]  ;;  %s1096_s7 = smov 113   ;;  %vm190_vm4 = vcmask 924672  }
  0x20   :  { %v105_v8 = vadd.s32 128, %v104_v5  ;;  %v110_v9 = vand.u32 15, %v104_v5  ;;  %964 = vst.sshfl [vmem:[#allocation2 + $0x2] sm:$0x33 pattern:$0x75316420] %v59_v7  ;;  %v75_v18 = vcombine.low %v965_v12, %v966_v16 }
  0x21   :  { %v1154_v17 = vsub.s32 %v149_v10, %v1143_v11  ;;  %v968_v23 = vld [vmem:[%s1523_s0 + $0x2] ss:$4 sm:$0x3]  ;;  %v969_v24 = vld [vmem:[%s1523_s0 + $0xa] ss:$4 sm:$0x3] }
  0x22   :  { %v117_v13 = vand.u32 15, %v105_v8  ;;  %vm136_vm0 = vcmp.lt.s32.totalorder %v110_v9, 15  ;;  %vm130_vm1 = vcmp.gt.s32.totalorder %v110_v9, 0  ;;  %v92_v26 = vcombine.low %v968_v23, %v969_v24  ;;  %s1097_s8 = smov 1   ;;  %s978_s9 = sld [smem:[#allocation3 + $0x4]] }
  0x23   :  { %v973_v14 = vsel %vm136_vm0, 1.0, %v1095_v3  ;;  %v971_v15 = vsel %vm130_vm1, 1.0, %v1095_v3  ;;  %967 = vst.sshfl [vmem:[#allocation2 + $0xa] sm:$0x33 pattern:$0x75316420] %v75_v18  ;;  %v592_v29 = vstv %s1148_s26 }
  0x24   :  { %vm137_vm2 = vcmp.lt.s32.totalorder %v117_v13, 15  ;;  %vm131_vm3 = vcmp.gt.s32.totalorder %v117_v13, 0  ;;  %970 = vst.sshfl [vmem:[#allocation2 + $0x12] sm:$0x33 pattern:$0x75316420] %v92_v26 }
  0x25   :  { %v974_v19 = vsel %vm137_vm2, 1.0, %v1095_v3  ;;  %v972_v20 = vsel %vm131_vm3, 1.0, %v1095_v3  ;;  %s1007_s10 = sld [smem:[#allocation3 + $0x1f]]  ;;  %s1098_s11 = smov 127   ;;  %v166_v32 = vstv %s975_s29  ;;  %vm172_vm5 = vcmask 1039360  }
  0x26   :  { %v179_v21 = vcombine.low %v973_v14, %v974_v19  ;;  %v146_v22 = vcombine.low %v971_v15, %v972_v20  ;;  %s1099_s12 = smov 15   ;;  %s981_s13 = sld [smem:[#allocation3 + $0x7]]  ;;  %vm238_vm6 = vcmask 7168   ;;  %vm257_vm7 = vcmask 121856  }
  0x27   :  { %v1164_v28 = vld [vmem:[#allocation2] sm:$0x3f]  ;;  %s1010_s14 = sld [smem:[#allocation3 + $0x22]]  ;;  %s1100_s15 = smov 17   ;;  %vm287_vm8 = vcmask 138240   ;;  %vm157_vm9 = vcmask 908288  }
  0x28   :  { %v186_v25 = vrot.slane %v179_v21, %v1154_v17  ;;  %v153_v27 = vrot.slane %v146_v22, %v1154_v17  ;;  %v593_v30 = vmul.f32 %v592_v29, %v1164_v28  ;;  %v1169_v31 = vld [vmem:[#allocation2] sm:$0x3f]  ;;  %s1174_s16 = sld [smem:[#allocation3 + $0xa]]  ;;  %v224_v35 = vstv %s978_s9  ;;  %s1013_s17 = sld [smem:[#allocation3 + $0x25]] }
  0x29   :  { %v167_v33 = vmul.f32 %v166_v32, %v1169_v31  ;;  %v223_v34 = vld [vmem:[#allocation2 + $0x2] sm:$0xf]  ;;  %s1101_s18 = smov 111   ;;  %s987_s19 = sld [smem:[#allocation3 + $0xd]]  ;;  %vm200_vm10 = vcmask 1031168   ;;  %vm218_vm11 = vcmask 916480  }
  0x2a   :  { %187 = vrot.lane.b32.xlu0 %v186_v25, %s1096_s7  ;;  %235 = vrot.lane.b32.xlu1 %v186_v25, %s1097_s8  ;;  %v625_v36 = vld [vmem:[#allocation2 + $0x2] sm:$0xf]  ;;  %v225_v38 = vmul.f32 %v224_v35, %v223_v34  ;;  %s1016_s20 = sld [smem:[#allocation3 + $0x28]]  ;;  %v1186_v46 = vld [vmem:[#allocation2 + $0x8] sm:$0x3f]  ;;  %s1019_s2 = sld [smem:[#allocation3 + $0x2b]] }
  0x2b   :  { %v626_v37 = vstv %s1007_s10  ;;  %v1178_v40 = vld [vmem:[#allocation2 + $0x2] sm:$0x3f]  ;;  %s990_s1 = sld [smem:[#allocation3 + $0x10]]  ;;  %v1189_v48 = vld [vmem:[#allocation2 + $0x8] sm:$0x3f]  ;;  %s1102_s21 = smov 95  }
  0x2c   :  { %v627_v39 = vmul.f32 %v626_v37, %v625_v36  ;;  %v273_v41 = vstv %s981_s13  ;;  %v1180_v42 = vld [vmem:[#allocation2 + $0x2] sm:$0x3f]  ;;  %s993_s22 = sld [smem:[#allocation3 + $0x13]]  ;;  %v342_v52 = vld [vmem:[#allocation2 + $0xa] sm:$0xf]  ;;  %s1022_s23 = sld [smem:[#allocation3 + $0x2e]] }
  0x2d   :  { %v661_v43 = vstv %s1010_s14  ;;  %v274_v44 = vmul.f32 %v273_v41, %v1178_v40  ;;  %v722_v54 = vld [vmem:[#allocation2 + $0xa] sm:$0xf]  ;;  %s996_s24 = sld [smem:[#allocation3 + $0x16]]  ;;  %s1025_s25 = sld [smem:[#allocation3 + $0x31]]  ;;  %v1205_v1 = vld [vmem:[#allocation2 + $0x10] sm:$0x3f] }
  0x2e   :  { %206 = vrot.lane.b32.xlu0 %v153_v27, %s1098_s11  ;;  %254 = vrot.lane.b32.xlu1 %v153_v27, %s1099_s12  ;;  %v662_v45 = vmul.f32 %v661_v43, %v1180_v42  ;;  %v309_v47 = vstv %s1174_s16  ;;  %v689_v49 = vstv %s1013_s17  ;;  %v1197_v58 = vld [vmem:[#allocation2 + $0xa] sm:$0x3f]  ;;  %s999_s26 = sld [smem:[#allocation3 + $0x19]]  ;;  %v1207_v3 = vld [vmem:[#allocation2 + $0x10] sm:$0x3f]  ;;  %s1028_s27 = sld [smem:[#allocation3 + $0x34]] }
  0x2f   :  { %v310_v50 = vmul.f32 %v309_v47, %v1186_v46  ;;  %v690_v51 = vmul.f32 %v689_v49, %v1189_v48  ;;  %v343_v53 = vstv %s987_s19  ;;  %v1199_v60 = vld [vmem:[#allocation2 + $0xa] sm:$0x3f]  ;;  %v439_v7 = vld [vmem:[#allocation2 + $0x12] sm:$0xf]  ;;  %s1005_s28 = sld [smem:[#allocation3 + $0x1d]]  ;;  %s976_s29 = sld [smem:[#allocation3 + $0x2]] }
  0x30   :  { %v723_v55 = vstv %s1016_s20  ;;  %v344_v56 = vmul.f32 %v343_v53, %v342_v52  ;;  %v758_v61 = vstv %s1019_s2  ;;  %v819_v9 = vld [vmem:[#allocation2 + $0x12] sm:$0xf]  ;;  %s1225_s30 = sld [smem:[#allocation3 + $0x1e]]  ;;  %s1227_s4 = sld [smem:[#allocation3 + $0x3]]  ;;  %v613_v35 = vld [vmem:[#allocation2] sm:$0x3f] }
  0x31   :  { %v724_v57 = vmul.f32 %v723_v55, %v722_v54  ;;  %v378_v59 = vstv %s990_s1  ;;  %v759_v63 = vmul.f32 %v758_v61, %v1199_v60  ;;  %v1215_v14 = vld [vmem:[#allocation2 + $0x12] sm:$0x3f]  ;;  %s1231_s5 = sld [smem:[#allocation3 + $0x20]]  ;;  %s1233_s6 = sld [smem:[#allocation3 + $0x5]]  ;;  %v205_v36 = vld [vmem:[#allocation2] sm:$0x3f] }
  0x32   :  { %284 = vrot.lane.b32.xlu0 %v186_v25, %s1100_s15  ;;  %595 = vrot.lane.b32.xlu1 %v593_v30, %s1098_s11  ;;  %v379_v62 = vmul.f32 %v378_v59, %v1197_v58  ;;  %v406_v2 = vstv %s993_s22  ;;  %v786_v4 = vstv %s1022_s23  ;;  %v1217_v16 = vld [vmem:[#allocation2 + $0x12] sm:$0x3f]  ;;  %v636_v41 = vld [vmem:[#allocation2 + $0x2] sm:$0x3f]  ;;  %s1246_s7 = sld [smem:[#allocation3 + $0x21]]  ;;  %s1248_s8 = sld [smem:[#allocation3 + $0x6]] }
  0x33   :  { %v407_v5 = vmul.f32 %v406_v2, %v1205_v1  ;;  %v787_v6 = vmul.f32 %v786_v4, %v1207_v3  ;;  %v440_v8 = vstv %s996_s24  ;;  %v820_v10 = vstv %s1025_s25  ;;  %v234_v43 = vld [vmem:[#allocation2 + $0x2] sm:$0x3f]  ;;  %s1103_s9 = smov 126   ;;  %s1011_s10 = sld [smem:[#allocation3 + $0x23]] }
  0x34   :  { %v441_v12 = vmul.f32 %v440_v8, %v439_v7  ;;  %v821_v13 = vmul.f32 %v820_v10, %v819_v9  ;;  %v475_v15 = vstv %s999_s26  ;;  %v855_v18 = vstv %s1028_s27  ;;  %v648_v55 = vld [vmem:[#allocation2 + $0x2] sm:$0x3f]  ;;  %s1104_s12 = smov 112   ;;  %s1014_s13 = sld [smem:[#allocation3 + $0x26]] }
  0x35   :  { %v476_v19 = vmul.f32 %v475_v15, %v1215_v14  ;;  %v856_v20 = vmul.f32 %v855_v18, %v1217_v16  ;;  %v603_v26 = vstv %s1005_s28  ;;  %s985_s14 = sld [smem:[#allocation3 + $0xb]]  ;;  %s1105_s16 = smov 110   ;;  %vm248_vm12 = vcmask 900096  }
  0x36   :  { %154 = vrot.lane.b32.xlu1 %v153_v27, %s1101_s18  ;;  %169 = vrot.lane.b32.xlu0 %v167_v33, %s1098_s11  ;;  %v194_v27 = vstv %s976_s29  ;;  %v212_v49 = vstv %s1227_s4  ;;  %s1275_s17 = sld [smem:[#allocation3 + $0x27]]  ;;  %s1106_s19 = smov 96   ;;  %vm267_vm13 = vcmask 785408   ;;  %vm279_vm14 = vcmask 777216  }
  0x37   :  { %v638_v61 = vstv %s1231_s5  ;;  %s1017_s20 = sld [smem:[#allocation3 + $0x29]]  ;;  %s988_s1 = sld [smem:[#allocation3 + $0xe]]  ;;  %vm297_vm15 = vcmask 769024   ;;  %vm518_vm0 = vcmask 1042296   ;;  %vm520_vm1 = vcmask 1041408  }
  0x38   :  { %v650_v7 = vstv %s1246_s7  ;;  %v261_v8 = vstv %s1248_s8  ;;  %s1107_s2 = smov 94   ;;  %s989_s22 = sld [smem:[#allocation3 + $0xf]]  ;;  %vm522_vm2 = vcmask 902144   ;;  %vm576_vm3 = vcmp.lt.s32.totalorder %v103_v0, 256 }
  0x39   :  { %v672_v15 = vstv %s1011_s10  ;;  %s1020_s23 = sld [smem:[#allocation3 + $0x2c]]  ;;  %s991_s24 = sld [smem:[#allocation3 + $0x11]] }
  0x3a   :  { %227 = vrot.lane.b32.xlu0 %v225_v38, %s1101_s18  ;;  %629 = vrot.lane.b32.xlu1 %v627_v39, %s1101_s18  ;;  %v615_v39 = vstv %s1225_s30  ;;  %s1023_s25 = sld [smem:[#allocation3 + $0x2f]]  ;;  %s994_s26 = sld [smem:[#allocation3 + $0x14]] }
  0x3b   :  { %s1024_s27 = sld [smem:[#allocation3 + $0x30]]  ;;  %s995_s28 = sld [smem:[#allocation3 + $0x15]] }
  0x3c   :  { %s1026_s29 = sld [smem:[#allocation3 + $0x32]]  ;;  %s997_s30 = sld [smem:[#allocation3 + $0x17]] }
  0x3d   :  { %s1027_s4 = sld [smem:[#allocation3 + $0x33]]  ;;  %s998_s5 = sld [smem:[#allocation3 + $0x18]] }
  0x3e   :  { %276 = vrot.lane.b32.xlu0 %v274_v44, %s1102_s21  ;;  %664 = vrot.lane.b32.xlu1 %v662_v45, %s1102_s21  ;;  %s1000_s7 = sld [smem:[#allocation3 + $0x1a]]  ;;  %s142_s8 = sld [smem:[#allocation3]] }
  0x3f   :  { %s1367_s10 = sld [smem:[#allocation3 + $0x24]] }
  0x42   :  { %312 = vrot.lane.b32.xlu0 %v310_v50, %s1098_s11  ;;  %692 = vrot.lane.b32.xlu1 %v690_v51, %s1098_s11 }
  0x46   :  { %346 = vrot.lane.b32.xlu0 %v344_v56, %s1101_s18  ;;  %726 = vrot.lane.b32.xlu1 %v724_v57, %s1101_s18  ;;  %v253_v56 = vld [vmem:[#allocation2 + $0x2] sm:$0x3f] }
  0x4a   :  { %381 = vrot.lane.b32.xlu0 %v379_v62, %s1102_s21  ;;  %761 = vrot.lane.b32.xlu1 %v759_v63, %s1102_s21  ;;  %v242_v62 = vstv %s1233_s6  ;;  %s1029_s6 = sld [smem:[#allocation3 + $0x35]] }
  0x4e   :  { %409 = vrot.lane.b32.xlu0 %v407_v5, %s1098_s11  ;;  %789 = vrot.lane.b32.xlu1 %v787_v6, %s1098_s11  ;;  %s982_s11 = sld [smem:[#allocation3 + $0x8]] }
  0x52   :  { %443 = vrot.lane.b32.xlu0 %v441_v12, %s1101_s18  ;;  %823 = vrot.lane.b32.xlu1 %v821_v13, %s1101_s18  ;;  %s986_s18 = sld [smem:[#allocation3 + $0xc]] }
  0x54   :  { %v291_v18 = vstv %s982_s11  ;;  %s1371_s11 = sld [smem:[#allocation3 + $0x9]] }
  0x56   :  { %478 = vrot.lane.b32.xlu0 %v476_v19, %s1102_s21  ;;  %858 = vrot.lane.b32.xlu1 %v856_v20, %s1102_s21  ;;  %s1018_s21 = sld [smem:[#allocation3 + $0x2a]] }
  0x9c   :  { %v188_v21 = vpop.permute.xlu0 %187  ;;  %v236_v22 = vpop.permute.xlu1 %235 }
  0x9d   :  { %v189_v23 = vrot.slane %v188_v21, 6  ;;  %v237_v25 = vrot.slane %v236_v22, 6 }
  0x9f   :  { %v1229_v24 = vsel %vm190_vm4, %v189_v23, %v188_v21  ;;  %v1243_v45 = vsel %vm238_vm6, %v237_v25, %v236_v22  ;;  %v700_v22 = vstv %s1014_s13  ;;  %v320_v23 = vstv %s985_s14  ;;  %v330_v25 = vld [vmem:[#allocation2 + $0x8] sm:$0x3f]  ;;  %s1405_s13 = sld [smem:[#allocation3 + $0x12]]  ;;  %s1030_s14 = sld [smem:[#allocation5 + $0x1]] }
  0xa0   :  { %v207_v29 = vpop.permute.xlu0 %206  ;;  %v602_v30 = vmul.f32 %v1164_v28, %v1229_v24  ;;  %v193_v32 = vmul.f32 %v1229_v24, %v1169_v31  ;;  %v255_v33 = vpop.permute.xlu1 %254  ;;  %v637_v53 = vmul.f32 %v636_v41, %v1243_v45  ;;  %v241_v54 = vmul.f32 %v1243_v45, %v234_v43  ;;  %v365_v43 = vld [vmem:[#allocation2 + $0xa] sm:$0x3f] }
  0xa1   :  { %v208_v34 = vrot.slane %v207_v29, 6  ;;  %v256_v47 = vrot.slane %v255_v33, 6  ;;  %v699_v21 = vmul.f32 %v1189_v48, %v1229_v24  ;;  %v355_v41 = vstv %s988_s1 }
  0xa2   :  { %v604_v37 = vmul.f32 %v603_v26, %v602_v30  ;;  %v195_v38 = vmul.f32 %v194_v27, %v193_v32  ;;  %v639_v63 = vmul.f32 %v638_v61, %v637_v53  ;;  %v243_v2 = vmul.f32 %v242_v62, %v241_v54  ;;  %v733_v30 = vld [vmem:[#allocation2 + $0xa] sm:$0x3f] }
  0xa3   :  { %v1241_v44 = vsel %vm172_vm5, %v208_v34, %v207_v29  ;;  %v1256_v57 = vsel %vm257_vm7, %v256_v47, %v255_v33  ;;  %v701_v26 = vmul.f32 %v700_v22, %v699_v21  ;;  %v712_v32 = vstv %s1275_s17  ;;  %v353_v33 = vld [vmem:[#allocation2 + $0xa] sm:$0x3f] }
  0xa4   :  { %606 = vrot.lane.b32.xlu1 %v604_v37, %s1103_s9  ;;  %197 = vrot.lane.b32.xlu0 %v195_v38, %s1103_s9  ;;  %v614_v28 = vmul.f32 %v613_v35, %v1241_v44  ;;  %v211_v31 = vmul.f32 %v1241_v44, %v205_v36  ;;  %v285_v50 = vpop.permute.xlu0 %284  ;;  %v649_v4 = vmul.f32 %v648_v55, %v1256_v57  ;;  %v745_v38 = vld [vmem:[#allocation2 + $0xa] sm:$0x3f]  ;;  %v832_v21 = vstv %s1026_s29 }
  0xa5   :  { %v286_v59 = vrot.slane %v285_v50, 6  ;;  %v260_v5 = vmul.f32 %v1256_v57, %v253_v56  ;;  %v331_v48 = vmul.f32 %v330_v25, %v1241_v44  ;;  %v734_v36 = vmul.f32 %v733_v30, %v1243_v45 }
  0xa6   :  { %v616_v51 = vmul.f32 %v615_v39, %v614_v28  ;;  %v213_v52 = vmul.f32 %v212_v49, %v211_v31  ;;  %v651_v9 = vmul.f32 %v650_v7, %v649_v4  ;;  %v354_v37 = vmul.f32 %v353_v33, %v1243_v45 }
  0xa7   :  { %v1265_v6 = vsel %vm287_vm8, %v286_v59, %v285_v50  ;;  %v262_v10 = vmul.f32 %v261_v8, %v260_v5  ;;  %v735_v39 = vstv %s1017_s20  ;;  %v746_v28 = vmul.f32 %v745_v38, %v1256_v57 }
  0xa8   :  { %618 = vrot.lane.b32.xlu1 %v616_v51, %s1104_s12  ;;  %215 = vrot.lane.b32.xlu0 %v213_v52, %s1104_s12  ;;  %v671_v12 = vmul.f32 %v1180_v42, %v1265_v6  ;;  %v290_v13 = vmul.f32 %v1265_v6, %v1178_v40  ;;  %v319_v42 = vmul.f32 %v1186_v46, %v1229_v24  ;;  %v710_v40 = vld [vmem:[#allocation2 + $0x8] sm:$0x3f]  ;;  %v332_v46 = vstv %s986_s18 }
  0xa9   :  { %v711_v29 = vmul.f32 %v710_v40, %v1241_v44  ;;  %v333_v35 = vmul.f32 %v332_v46, %v331_v48  ;;  %v736_v47 = vmul.f32 %v735_v39, %v734_v36  ;;  %v356_v49 = vmul.f32 %v355_v41, %v354_v37  ;;  %v170_v36 = vpop.permute.xlu0 %169 }
  0xaa   :  { %v673_v19 = vmul.f32 %v672_v15, %v671_v12  ;;  %v292_v20 = vmul.f32 %v291_v18, %v290_v13  ;;  %v321_v27 = vmul.f32 %v320_v23, %v319_v42  ;;  %v366_v31 = vmul.f32 %v365_v43, %v1256_v57 }
  0xab   :  { %v713_v34 = vmul.f32 %v712_v32, %v711_v29  ;;  %v747_v50 = vstv %s1018_s21  ;;  %v367_v51 = vstv %s989_s22  ;;  %v768_v54 = vmul.f32 %v1199_v60, %v1265_v6  ;;  %v807_v60 = vld [vmem:[#allocation2 + $0x10] sm:$0x3f] }
  0xac   :  { %641 = vrot.lane.b32.xlu1 %v639_v63, %s1105_s16  ;;  %245 = vrot.lane.b32.xlu0 %v243_v2, %s1105_s16  ;;  %v748_v52 = vmul.f32 %v747_v50, %v746_v28  ;;  %v368_v53 = vmul.f32 %v367_v51, %v366_v31  ;;  %v388_v55 = vmul.f32 %v1197_v58, %v1265_v6  ;;  %v769_v56 = vstv %s1020_s23  ;;  %v427_v58 = vld [vmem:[#allocation2 + $0x10] sm:$0x3f] }
  0xad   :  { %v389_v59 = vstv %s991_s24  ;;  %v770_v61 = vmul.f32 %v769_v56, %v768_v54  ;;  %v796_v63 = vmul.f32 %v1207_v3, %v1229_v24  ;;  %v416_v2 = vmul.f32 %v1205_v1, %v1229_v24  ;;  %v830_v3 = vld [vmem:[#allocation2 + $0x12] sm:$0x3f]  ;;  %v143_v54 = vld [vmem:[#allocation2] sm:$0x3f] }
  0xae   :  { %v390_v62 = vmul.f32 %v389_v59, %v388_v55  ;;  %v797_v4 = vstv %s1023_s25  ;;  %v417_v5 = vstv %s994_s26  ;;  %v809_v12 = vstv %s1024_s27  ;;  %v450_v1 = vld [vmem:[#allocation2 + $0x12] sm:$0x3f]  ;;  %v585_v55 = vld [vmem:[#allocation2] sm:$0x3f] }
  0xaf   :  { %v798_v7 = vmul.f32 %v797_v4, %v796_v63  ;;  %v418_v8 = vmul.f32 %v417_v5, %v416_v2  ;;  %v429_v13 = vstv %s995_s28  ;;  %v831_v18 = vmul.f32 %v830_v3, %v1243_v45 }
  0xb0   :  { %653 = vrot.lane.b32.xlu1 %v651_v9, %s1106_s19  ;;  %264 = vrot.lane.b32.xlu0 %v262_v10, %s1106_s19  ;;  %v808_v9 = vmul.f32 %v807_v60, %v1241_v44  ;;  %v428_v10 = vmul.f32 %v427_v58, %v1241_v44  ;;  %v452_v42 = vstv %s997_s30  ;;  %v462_v44 = vld [vmem:[#allocation2 + $0x12] sm:$0x3f]  ;;  %v865_v48 = vmul.f32 %v1217_v16, %v1265_v6  ;;  %v228_v16 = vpop.permute.xlu0 %227 }
  0xb1   :  { %v833_v40 = vmul.f32 %v832_v21, %v831_v18  ;;  %v463_v25 = vmul.f32 %v462_v44, %v1256_v57  ;;  %v485_v30 = vmul.f32 %v1215_v14, %v1265_v6  ;;  %v866_v32 = vstv %s1029_s6 }
  0xb2   :  { %v810_v24 = vmul.f32 %v809_v12, %v808_v9  ;;  %v430_v15 = vmul.f32 %v429_v13, %v428_v10  ;;  %v486_v46 = vstv %s1000_s7  ;;  %v161_v2 = vstv %s142_s8 }
  0xb3   :  { %v487_v33 = vmul.f32 %v486_v46, %v485_v30  ;;  %v171_v60 = vrot.slane %v170_v36, 2 }
  0xb4   :  { %675 = vrot.lane.b32.xlu1 %v673_v19, %s1107_s2  ;;  %294 = vrot.lane.b32.xlu0 %v292_v20, %s1107_s2  ;;  %v451_v19 = vmul.f32 %v450_v1, %v1243_v45  ;;  %v842_v20 = vld [vmem:[#allocation2 + $0x12] sm:$0x3f]  ;;  %v1332_v14 = vpop.permute.xlu0 %276 }
  0xb5   :  { %v843_v23 = vmul.f32 %v842_v20, %v1256_v57  ;;  %v867_v57 = vmul.f32 %v866_v32, %v865_v48  ;;  %v173_v10 = vsel %vm172_vm5, %v170_v36, %v171_v60  ;;  %v229_v20 = vrot.slane %v228_v16, 6 }
  0xb6   :  { %v453_v22 = vmul.f32 %v452_v42, %v451_v19  ;;  %v684_v60 = vstv %s1367_s10 }
  0xb7   :  { %v230_v48 = vsel %vm157_vm9, %v229_v20, %v228_v16 }
  0xb8   :  { %703 = vrot.lane.b32.xlu1 %v701_v26, %s1103_s9  ;;  %323 = vrot.lane.b32.xlu0 %v321_v27, %s1103_s9  ;;  %v844_v26 = vstv %s1027_s4  ;;  %v464_v27 = vstv %s998_s5  ;;  %v1336_v39 = vpop.permute.xlu0 %312 }
  0xb9   :  { %v845_v45 = vmul.f32 %v844_v26, %v843_v23  ;;  %v465_v29 = vmul.f32 %v464_v27, %v463_v25  ;;  %v314_v20 = vrot.slane %v1336_v39, 2 }
  0xbc   :  { %715 = vrot.lane.b32.xlu1 %v713_v34, %s1104_s12  ;;  %335 = vrot.lane.b32.xlu0 %v333_v35, %s1104_s12  ;;  %v596_v34 = vpop.permute.xlu1 %595  ;;  %v1340_v43 = vpop.permute.xlu0 %346 }
  0xbd   :  { %v597_v63 = vrot.slane %v596_v34, 2 }
  0xbf   :  { %v598_v9 = vsel %vm172_vm5, %v596_v34, %v597_v63 }
  0xc0   :  { %738 = vrot.lane.b32.xlu1 %v736_v47, %s1105_s16  ;;  %358 = vrot.lane.b32.xlu0 %v356_v49, %s1105_s16  ;;  %v155_v35 = vpop.permute.xlu1 %154  ;;  %v1344_v49 = vpop.permute.xlu0 %381 }
  0xc1   :  { %v156_v51 = vrot.slane %v155_v35, 6 }
  0xc4   :  { %750 = vrot.lane.b32.xlu1 %v748_v52, %s1106_s19  ;;  %370 = vrot.lane.b32.xlu0 %v368_v53, %s1106_s19  ;;  %v630_v37 = vpop.permute.xlu1 %629  ;;  %v1348_v31 = vpop.permute.xlu0 %409  ;;  %v1355_v53 = vsel %vm157_vm9, %v156_v51, %v155_v35 }
  0xc5   :  { %v160_v59 = vmul.f32 %v1355_v53, %v143_v54  ;;  %v631_v21 = vrot.slane %v630_v37, 6  ;;  %v682_v54 = vld [vmem:[#allocation2 + $0x8] sm:$0x3f] }
  0xc7   :  { %v162_v5 = vmul.f32 %v161_v2, %v160_v59  ;;  %v632_v30 = vsel %vm157_vm9, %v631_v21, %v630_v37 }
  0xc8   :  { %772 = vrot.lane.b32.xlu1 %v770_v61, %s1107_s2  ;;  %392 = vrot.lane.b32.xlu0 %v390_v62, %s1107_s2  ;;  %v1330_v38 = vpop.permute.xlu1 %664  ;;  %v1352_v52 = vpop.permute.xlu0 %443  ;;  %v586_v62 = vmul.f32 %v585_v55, %v1355_v53  ;;  %v278_v55 = vrot.slane %v1332_v14, 6 }
  0xc9   :  { %v666_v16 = vrot.slane %v1330_v38, 6 }
  0xcc   :  { %800 = vrot.lane.b32.xlu1 %v798_v7, %s1103_s9  ;;  %420 = vrot.lane.b32.xlu0 %v418_v8, %s1103_s9  ;;  %v1334_v6 = vpop.permute.xlu1 %692  ;;  %s1003_s9 = sld [smem:[#allocation3 + $0x1b]]  ;;  %v1360_v61 = vpop.permute.xlu0 %478 }
  0xcd   :  { %v694_v21 = vrot.slane %v1334_v6, 2 }
  0xd0   :  { %812 = vrot.lane.b32.xlu1 %v810_v24, %s1104_s12  ;;  %432 = vrot.lane.b32.xlu0 %v430_v15, %s1104_s12  ;;  %v1338_v41 = vpop.permute.xlu1 %726  ;;  %v175_v24 = vadd.f32 %v173_v10, %v162_v5  ;;  %s1403_s12 = sld [smem:[#allocation3 + $0x2d]] }
  0xd2   :  { %v587_v4 = vstv %s1003_s9 }
  0xd3   :  { %v588_v7 = vmul.f32 %v587_v4, %v586_v62  ;;  %v302_v62 = vld [vmem:[#allocation2 + $0x8] sm:$0x3f] }
  0xd4   :  { %835 = vrot.lane.b32.xlu1 %v833_v40, %s1105_s16  ;;  %455 = vrot.lane.b32.xlu0 %v453_v22, %s1105_s16  ;;  %v1342_v47 = vpop.permute.xlu1 %761  ;;  %s495_s16 = sld [smem:[#allocation5]] }
  0xd5   :  { %v600_v15 = vadd.f32 %v598_v9, %v588_v7  ;;  %v683_v9 = vmul.f32 %v682_v54, %v1355_v53 }
  0xd8   :  { %847 = vrot.lane.b32.xlu1 %v845_v45, %s1106_s19  ;;  %467 = vrot.lane.b32.xlu0 %v465_v29, %s1106_s19  ;;  %v1346_v28 = vpop.permute.xlu1 %789 }
  0xdc   :  { %869 = vrot.lane.b32.xlu1 %v867_v57, %s1107_s2  ;;  %489 = vrot.lane.b32.xlu0 %v487_v33, %s1107_s2  ;;  %v1350_v50 = vpop.permute.xlu1 %823 }
  0xe0   :  { %v1357_v56 = vpop.permute.xlu1 %858 }
 0x116   :  { %v607_v58 = vpop.permute.xlu1 %606  ;;  %v198_v8 = vpop.permute.xlu0 %197 }
 0x117   :  { %v608_v3 = vrot.slane %v607_v58, 2  ;;  %v199_v12 = vrot.slane %v198_v8, 2 }
 0x119   :  { %v609_v13 = vsel %vm200_vm10, %v607_v58, %v608_v3  ;;  %v201_v1 = vsel %vm200_vm10, %v198_v8, %v199_v12  ;;  %v304_v58 = vstv %s1371_s11  ;;  %v303_v3 = vmul.f32 %v302_v62, %v1355_v53 }
 0x11a   :  { %v619_v18 = vpop.permute.xlu1 %618  ;;  %v216_v19 = vpop.permute.xlu0 %215  ;;  %v611_v40 = vadd.f32 %v609_v13, %v600_v15  ;;  %v203_v22 = vadd.f32 %v201_v1, %v175_v24  ;;  %v280_v13 = vsel %vm279_vm14, %v278_v55, %v1332_v14  ;;  %v667_v1 = vsel %vm279_vm14, %v666_v16, %v1330_v38 }
 0x11b   :  { %v620_v42 = vrot.slane %v619_v18, 2  ;;  %v217_v44 = vrot.slane %v216_v19, 2 }
 0x11d   :  { %v621_v23 = vsel %vm218_vm11, %v619_v18, %v620_v42  ;;  %v219_v25 = vsel %vm218_vm11, %v216_v19, %v217_v44 }
 0x11e   :  { %v623_v26 = vadd.f32 %v621_v23, %v611_v40  ;;  %v221_v27 = vadd.f32 %v219_v25, %v203_v22  ;;  %v642_v45 = vpop.permute.xlu1 %641  ;;  %v246_v29 = vpop.permute.xlu0 %245  ;;  %v685_v40 = vmul.f32 %v684_v60, %v683_v9  ;;  %v305_v23 = vmul.f32 %v304_v58, %v303_v3 }
 0x11f   :  { %v643_v32 = vrot.slane %v642_v45, 6  ;;  %v247_v46 = vrot.slane %v246_v29, 6 }
 0x120   :  { %v634_v57 = vadd.f32 %v632_v30, %v623_v26  ;;  %v232_v33 = vadd.f32 %v230_v48, %v221_v27  ;;  %v315_v48 = vsel %vm172_vm5, %v1336_v39, %v314_v20  ;;  %v695_v30 = vsel %vm172_vm5, %v1334_v6, %v694_v21 }
 0x121   :  { %v644_v34 = vsel %vm248_vm12, %v643_v32, %v642_v45  ;;  %v249_v35 = vsel %vm248_vm12, %v247_v46, %v246_v29  ;;  %v348_v32 = vrot.slane %v1340_v43, 6  ;;  %v728_v46 = vrot.slane %v1338_v41, 6 }
 0x122   :  { %v654_v36 = vpop.permute.xlu1 %653  ;;  %v265_v51 = vpop.permute.xlu0 %264  ;;  %v646_v63 = vadd.f32 %v644_v34, %v634_v57  ;;  %v251_v2 = vadd.f32 %v249_v35, %v232_v33 }
 0x123   :  { %v655_v59 = vrot.slane %v654_v36, 6  ;;  %v266_v37 = vrot.slane %v265_v51, 6  ;;  %v349_v60 = vsel %vm157_vm9, %v348_v32, %v1340_v43  ;;  %v763_v43 = vrot.slane %v1342_v47, 6 }
 0x124   :  { %v411_v32 = vrot.slane %v1348_v31, 2 }
 0x125   :  { %v656_v4 = vsel %vm267_vm13, %v655_v59, %v654_v36  ;;  %v268_v5 = vsel %vm267_vm13, %v266_v37, %v265_v51 }
 0x126   :  { %v658_v7 = vadd.f32 %v656_v4, %v646_v63  ;;  %v270_v8 = vadd.f32 %v268_v5, %v251_v2  ;;  %v676_v10 = vpop.permute.xlu1 %675  ;;  %v295_v12 = vpop.permute.xlu0 %294  ;;  %v729_v4 = vsel %vm157_vm9, %v728_v46, %v1338_v41  ;;  %v399_v41 = vld [vmem:[#allocation2 + $0x10] sm:$0x3f]  ;;  %v791_v46 = vrot.slane %v1346_v28, 2 }
 0x127   :  { %v677_v24 = vrot.slane %v676_v10, 6  ;;  %v296_v15 = vrot.slane %v295_v12, 6 }
 0x128   :  { %v669_v18 = vadd.f32 %v667_v1, %v658_v7  ;;  %v282_v19 = vadd.f32 %v280_v13, %v270_v8  ;;  %v779_v13 = vld [vmem:[#allocation2 + $0x10] sm:$0x3f]  ;;  %v383_v1 = vrot.slane %v1344_v49, 6 }
 0x129   :  { %v678_v42 = vsel %vm297_vm15, %v677_v24, %v676_v10  ;;  %v298_v44 = vsel %vm297_vm15, %v296_v15, %v295_v12 }
 0x12a   :  { %v680_v22 = vadd.f32 %v678_v42, %v669_v18  ;;  %v300_v25 = vadd.f32 %v298_v44, %v282_v19  ;;  %v704_v14 = vpop.permute.xlu1 %703  ;;  %v324_v26 = vpop.permute.xlu0 %323  ;;  %v781_v42 = vstv %s1403_s12  ;;  %v401_v44 = vstv %s1405_s13 }
 0x12b   :  { %v705_v27 = vrot.slane %v704_v14, 2  ;;  %v325_v38 = vrot.slane %v324_v26, 2 }
 0x12c   :  { %v686_v45 = vadd.f32 %v685_v40, %v680_v22  ;;  %v306_v29 = vadd.f32 %v305_v23, %v300_v25  ;;  %v780_v23 = vmul.f32 %v779_v13, %v1355_v53 }
 0x12d   :  { %v706_v36 = vsel %vm200_vm10, %v704_v14, %v705_v27  ;;  %v326_v51 = vsel %vm200_vm10, %v324_v26, %v325_v38  ;;  %v400_v14 = vmul.f32 %v399_v41, %v1355_v53  ;;  %v384_v27 = vsel %vm279_vm14, %v383_v1, %v1344_v49 }
 0x12e   :  { %v697_v57 = vadd.f32 %v695_v30, %v686_v45  ;;  %v317_v33 = vadd.f32 %v315_v48, %v306_v29  ;;  %v716_v34 = vpop.permute.xlu1 %715  ;;  %v336_v35 = vpop.permute.xlu0 %335  ;;  %v764_v38 = vsel %vm279_vm14, %v763_v43, %v1342_v47  ;;  %v782_v53 = vmul.f32 %v781_v42, %v780_v23 }
 0x12f   :  { %v717_v54 = vrot.slane %v716_v34, 2  ;;  %v337_v55 = vrot.slane %v336_v35, 2 }
 0x130   :  { %v708_v16 = vadd.f32 %v706_v36, %v697_v57  ;;  %v328_v59 = vadd.f32 %v326_v51, %v317_v33 }
 0x131   :  { %v718_v39 = vsel %vm218_vm11, %v716_v34, %v717_v54  ;;  %v338_v6 = vsel %vm218_vm11, %v336_v35, %v337_v55  ;;  %v402_v35 = vmul.f32 %v401_v44, %v400_v14  ;;  %v480_v44 = vrot.slane %v1360_v61, 6 }
 0x132   :  { %v720_v37 = vadd.f32 %v718_v39, %v708_v16  ;;  %v340_v62 = vadd.f32 %v338_v6, %v328_v59  ;;  %v739_v63 = vpop.permute.xlu1 %738  ;;  %v359_v2 = vpop.permute.xlu0 %358  ;;  %v412_v59 = vsel %vm172_vm5, %v1348_v31, %v411_v32  ;;  %v792_v39 = vsel %vm172_vm5, %v1346_v28, %v791_v46 }
 0x133   :  { %v740_v5 = vrot.slane %v739_v63, 6  ;;  %v360_v58 = vrot.slane %v359_v2, 6  ;;  %v445_v6 = vrot.slane %v1352_v52, 6 }
 0x134   :  { %v731_v7 = vadd.f32 %v729_v4, %v720_v37  ;;  %v351_v8 = vadd.f32 %v349_v60, %v340_v62  ;;  %v825_v37 = vrot.slane %v1350_v50, 6 }
 0x135   :  { %v741_v9 = vsel %vm248_vm12, %v740_v5, %v739_v63  ;;  %v361_v10 = vsel %vm248_vm12, %v360_v58, %v359_v2  ;;  %v446_v1 = vsel %vm157_vm9, %v445_v6, %v1352_v52 }
 0x136   :  { %v751_v3 = vpop.permute.xlu1 %750  ;;  %v371_v12 = vpop.permute.xlu0 %370  ;;  %v743_v18 = vadd.f32 %v741_v9, %v731_v7  ;;  %v363_v19 = vadd.f32 %v361_v10, %v351_v8  ;;  %v826_v43 = vsel %vm157_vm9, %v825_v37, %v1350_v50 }
 0x137   :  { %v752_v24 = vrot.slane %v751_v3, 6  ;;  %v372_v15 = vrot.slane %v371_v12, 6 }
 0x139   :  { %v753_v20 = vsel %vm267_vm13, %v752_v24, %v751_v3  ;;  %v373_v21 = vsel %vm267_vm13, %v372_v15, %v371_v12 }
 0x13a   :  { %v755_v40 = vadd.f32 %v753_v20, %v743_v18  ;;  %v375_v22 = vadd.f32 %v373_v21, %v363_v19  ;;  %v773_v25 = vpop.permute.xlu1 %772  ;;  %v393_v26 = vpop.permute.xlu0 %392 }
 0x13b   :  { %v774_v45 = vrot.slane %v773_v25, 6  ;;  %v394_v29 = vrot.slane %v393_v26, 6 }
 0x13c   :  { %v766_v48 = vadd.f32 %v764_v38, %v755_v40  ;;  %v386_v30 = vadd.f32 %v384_v27, %v375_v22  ;;  %v860_v40 = vrot.slane %v1357_v56, 6 }
 0x13d   :  { %v775_v57 = vsel %vm297_vm15, %v774_v45, %v773_v25  ;;  %v395_v33 = vsel %vm297_vm15, %v394_v29, %v393_v26  ;;  %v481_v29 = vsel %vm279_vm14, %v480_v44, %v1360_v61 }
 0x13e   :  { %v777_v34 = vadd.f32 %v775_v57, %v766_v48  ;;  %v397_v36 = vadd.f32 %v395_v33, %v386_v30  ;;  %v801_v49 = vpop.permute.xlu1 %800  ;;  %v421_v51 = vpop.permute.xlu0 %420  ;;  %v861_v48 = vsel %vm279_vm14, %v860_v40, %v1357_v56  ;;  %v876_v33 = vstv %s1030_s14 }
 0x13f   :  { %v802_v54 = vrot.slane %v801_v49, 2  ;;  %v422_v47 = vrot.slane %v421_v51, 2 }
 0x140   :  { %v783_v55 = vadd.f32 %v782_v53, %v777_v34  ;;  %v403_v16 = vadd.f32 %v402_v35, %v397_v36  ;;  %v496_v34 = vstv %s495_s16 }
 0x141   :  { %v803_v4 = vsel %vm200_vm10, %v801_v49, %v802_v54  ;;  %v423_v5 = vsel %vm200_vm10, %v421_v51, %v422_v47 }
 0x142   :  { %v794_v62 = vadd.f32 %v792_v39, %v783_v55  ;;  %v414_v63 = vadd.f32 %v412_v59, %v403_v16  ;;  %v813_v2 = vpop.permute.xlu1 %812  ;;  %v433_v60 = vpop.permute.xlu0 %432 }
 0x143   :  { %v814_v58 = vrot.slane %v813_v2, 2  ;;  %v434_v7 = vrot.slane %v433_v60, 2 }
 0x144   :  { %v805_v8 = vadd.f32 %v803_v4, %v794_v62  ;;  %v425_v9 = vadd.f32 %v423_v5, %v414_v63 }
 0x145   :  { %v815_v31 = vsel %vm218_vm11, %v813_v2, %v814_v58  ;;  %v435_v28 = vsel %vm218_vm11, %v433_v60, %v434_v7 }
 0x146   :  { %v817_v10 = vadd.f32 %v815_v31, %v805_v8  ;;  %v437_v3 = vadd.f32 %v435_v28, %v425_v9  ;;  %v836_v12 = vpop.permute.xlu1 %835  ;;  %v456_v13 = vpop.permute.xlu0 %455 }
 0x147   :  { %v837_v24 = vrot.slane %v836_v12, 6  ;;  %v457_v15 = vrot.slane %v456_v13, 6 }
 0x148   :  { %v828_v41 = vadd.f32 %v826_v43, %v817_v10  ;;  %v448_v18 = vadd.f32 %v446_v1, %v437_v3 }
 0x149   :  { %v838_v19 = vsel %vm248_vm12, %v837_v24, %v836_v12  ;;  %v458_v20 = vsel %vm248_vm12, %v457_v15, %v456_v13  ;;  %v40_v15 = vld [vmem:[%s1523_s0 + $0x8] sm:$0x77] }
 0x14a   :  { %v848_v21 = vpop.permute.xlu1 %847  ;;  %v468_v42 = vpop.permute.xlu0 %467  ;;  %v840_v23 = vadd.f32 %v838_v19, %v828_v41  ;;  %v460_v50 = vadd.f32 %v458_v20, %v448_v18  ;;  %v44_v18 = vcombine.high %v40_v15, %v40_v15  ;;  %49 = vst [vmem:[%s1526_s3 + $0x10] sm:$0x7] %v40_v15 }
 0x14b   :  { %v849_v52 = vrot.slane %v848_v21, 6  ;;  %v469_v22 = vrot.slane %v468_v42, 6 }
 0x14c   :  { %50 = vst [vmem:[%s1526_s3 + $0x18] sm:$0x7] %v44_v18 }
 0x14d   :  { %v850_v25 = vsel %vm267_vm13, %v849_v52, %v848_v21  ;;  %v470_v14 = vsel %vm267_vm13, %v469_v22, %v468_v42 }
 0x14e   :  { %v852_v26 = vadd.f32 %v850_v25, %v840_v23  ;;  %v472_v27 = vadd.f32 %v470_v14, %v460_v50  ;;  %v870_v38 = vpop.permute.xlu1 %869  ;;  %v490_v45 = vpop.permute.xlu0 %489 }
 0x14f   :  { %v871_v30 = vrot.slane %v870_v38, 6  ;;  %v491_v32 = vrot.slane %v490_v45, 6 }
 0x150   :  { %v863_v46 = vadd.f32 %v861_v48, %v852_v26  ;;  %v483_v57 = vadd.f32 %v481_v29, %v472_v27 }
 0x151   :  { %v872_v53 = vsel %vm297_vm15, %v871_v30, %v870_v38  ;;  %v492_v35 = vsel %vm297_vm15, %v491_v32, %v490_v45 }
 0x152   :  { %v874_v36 = vadd.f32 %v872_v53, %v863_v46  ;;  %v494_v49 = vadd.f32 %v492_v35, %v483_v57 }
 0x154   :  { %v1455_v51 = vadd.f32 %v876_v33, %v874_v36  ;;  %v1457_v54 = vadd.f32 %v496_v34, %v494_v49 }
 0x156   :  { %v499_v61 = vcombine.high %v1457_v54, %v1457_v54  ;;  %v506_v56 = vrot.slane %v1457_v54, %v1154_v17  ;;  %v886_v47 = vrot.slane %v1455_v51, %v1154_v17  ;;  %v879_v59 = vcombine.high %v1455_v51, %v1455_v51 }
 0x158   :  { %v513_v55 = vrot.slane %v499_v61, %v1154_v17  ;;  %v514_v16 = vcombine.high %v506_v56, %v506_v56  ;;  %v894_v39 = vcombine.high %v886_v47, %v886_v47  ;;  %v535_v6 = vsel %vm518_vm0, %v506_v56, -inf }
 0x159   :  { %v519_v62 = vsel %vm518_vm0, %v506_v56, inf  ;;  %v893_v7 = vrot.slane %v879_v59, %v1154_v17  ;;  %v898_v8 = vsel %vm518_vm0, %v886_v47, inf  ;;  %v912_v12 = vsel %vm518_vm0, %v886_v47, -inf  ;;  %v39_v17 = vld [vmem:[%s1523_s0] sm:$0x77] }
 0x15a   :  { %v536_v37 = vsel %vm520_vm1, %v514_v16, -inf  ;;  %v521_v63 = vsel %vm520_vm1, %v514_v16, inf  ;;  %v899_v4 = vsel %vm520_vm1, %v894_v39, inf  ;;  %v537_v5 = vsel %vm522_vm2, %v513_v55, -inf  ;;  %47 = vst [vmem:[%s1526_s3] sm:$0x7] %v39_v17 }
 0x15b   :  { %v538_v2 = vmax.f32 %v535_v6, %v536_v37  ;;  %v524_v60 = vmin.f32 %v519_v62, %v521_v63  ;;  %v523_v58 = vsel %vm522_vm2, %v513_v55, inf  ;;  %v901_v28 = vmin.f32 %v898_v8, %v899_v4 }
 0x15c   :  { %v913_v10 = vsel %vm520_vm1, %v894_v39, -inf  ;;  %v900_v3 = vsel %vm522_vm2, %v893_v7, inf  ;;  %v914_v43 = vsel %vm522_vm2, %v893_v7, -inf  ;;  %v43_v41 = vcombine.high %v39_v17, %v39_v17 }
 0x15d   :  { %v539_v9 = vmax.f32 %v538_v2, %v537_v5  ;;  %v525_v31 = vmin.f32 %v524_v60, %v523_v58  ;;  %v902_v13 = vmin.f32 %v901_v28, %v900_v3  ;;  %v915_v1 = vmax.f32 %v912_v12, %v913_v10 }
 0x15e   :  { %48 = vst [vmem:[%s1526_s3 + $0x8] sm:$0x7] %v43_v41  ;;  %v1108_v56 = vmov 1966171168  }
 0x15f   :  { %540 = vmax.xlane.f32.xlu1 %v539_v9  ;;  %526 = vmin.xlane.f32.xlu0 %v525_v31  ;;  %v916_v24 = vmax.f32 %v915_v1, %v914_v43  ;;  %v557_v47 = vunpack.c.l.s4 %v1108_v56 }
 0x161   :  { %v558_v55 = vunpack.c.0.s8 %v557_v47 }
 0x163   :  { %903 = vmin.xlane.f32.xlu0 %v902_v13  ;;  %v561_v6 = vsub.s32 %v558_v55, %v1143_v11 }
 0x167   :  { %917 = vmax.xlane.f32.xlu0 %v916_v24 }
 0x1ec   :  { %v541_v19 = vpop.xlane.xlu1 %540  ;;  %v527_v20 = vpop.xlane.xlu0 %526 }
 0x1ed   :  { %v542_v21 = vrot.slane %v541_v19, 4  ;;  %v528_v42 = vrot.slane %v527_v20, 4 }
 0x1ef   :  { %v543_v44 = vmax.f32 %v541_v19, %v542_v21  ;;  %v529_v40 = vmin.f32 %v527_v20, %v528_v42 }
 0x1f0   :  { %v904_v52 = vpop.xlane.xlu0 %903 }
 0x1f1   :  { %v544_v22 = vrot.slane %v543_v44, 2  ;;  %v530_v23 = vrot.slane %v529_v40, 2  ;;  %v905_v50 = vrot.slane %v904_v52, 4 }
 0x1f3   :  { %v906_v25 = vmin.f32 %v904_v52, %v905_v50  ;;  %v531_v14 = vmin.f32 %v529_v40, %v530_v23  ;;  %v545_v26 = vmax.f32 %v543_v44, %v544_v22 }
 0x1f4   :  { %v918_v27 = vpop.xlane.xlu0 %917 }
 0x1f5   :  { %v907_v38 = vrot.slane %v906_v25, 2  ;;  %v919_v45 = vrot.slane %v918_v27, 4  ;;  %v532_v29 = vrot.slane %v531_v14, 1  ;;  %v546_v48 = vrot.slane %v545_v26, 1 }
 0x1f7   :  { %v920_v30 = vmax.f32 %v918_v27, %v919_v45  ;;  %v533_v32 = vmin.f32 %v531_v14, %v532_v29  ;;  %v547_v46 = vmax.f32 %v545_v26, %v546_v48  ;;  %v908_v57 = vmin.f32 %v906_v25, %v907_v38 }
 0x1f9   :  { %v921_v33 = vrot.slane %v920_v30, 2  ;;  %1033 = vpush %v533_v32  ;;  %v909_v53 = vrot.slane %v908_v57, 1 }
 0x1fa   :  { %1035 = vpush %v547_v46 }
 0x1fb   :  { %v910_v34 = vmin.f32 %v908_v57, %v909_v53  ;;  %v922_v35 = vmax.f32 %v920_v30, %v921_v33 }
 0x1fd   :  { %1037 = vpush %v910_v34  ;;  %v923_v36 = vrot.slane %v922_v35, 1 }
 0x1ff   :  { %v924_v49 = vmax.f32 %v922_v35, %v923_v36 }
 0x201   :  { %1039 = vpush %v924_v49 }
 0x22a   :  { %s1034_s0 = spop %1033 }
 0x22b   :  { %s1036_s27 = spop %1035  ;;  %v552_v16 = vstv %s1034_s0 }
 0x22c   :  { %v549_v61 = vstv %s1036_s27  ;;  %v553_v39 = vsub.f32 %v1457_v54, %v552_v16 }
 0x22d   :  { %1060 = vrcp.f32 %v549_v61 }
 0x22e   :  { %s1038_s28 = spop %1037 }
 0x22f   :  { %v929_v63 = vstv %s1038_s28 }
 0x230   :  { %v930_v4 = vsub.f32 %v1455_v51, %v929_v63 }
 0x232   :  { %s1040_s29 = spop %1039 }
 0x233   :  { %v926_v59 = vstv %s1040_s29 }
 0x234   :  { %1062 = vrcp.f32 %v926_v59 }
 0x237   :  { %v1061_v37 = vpop.eup %1060 }
 0x238   :  { %v554_v62 = vmul.f32 %v1061_v37, %v553_v39 }
 0x23a   :  { %v562_v2 = vrot.slane %v554_v62, %v561_v6 }
 0x23c   :  { %564 = vrot.lane.b32.xlu1 %v562_v2, %s1100_s15  ;;  %v563_v60 = vcombine.high %v562_v2, %v562_v2 }
 0x23e   :  { %v1063_v5 = vpop.eup %1062  ;;  %566 = vrot.lane.b32.xlu0 %v563_v60, %s1100_s15 }
 0x23f   :  { %v931_v58 = vmul.f32 %v1063_v5, %v930_v4 }
 0x241   :  { %v939_v7 = vrot.slane %v931_v58, %v561_v6 }
 0x243   :  { %941 = vrot.lane.b32.xlu1 %v939_v7, %s1100_s15  ;;  %v940_v8 = vcombine.high %v939_v7, %v939_v7 }
 0x247   :  { %943 = vrot.lane.b32.xlu1 %v940_v8, %s1100_s15 }
 0x2ae   :  { %v565_v11 = vpop.permute.xlu1 %564 }
 0x2af   :  { %v568_v54 = vrot.slane %v565_v11, 1 }
 0x2b0   :  { %v567_v9 = vpop.permute.xlu0 %566 }
 0x2b1   :  { %v570_v31 = vsel %vm287_vm8, %v565_v11, %v568_v54  ;;  %v569_v28 = vrot.slane %v567_v9, 1 }
 0x2b2   :  { %1001 = vst.msk [vmem:[%s1526_s3 + $0x3] ss:$8 sm:$0x3] %vm576_vm3, %v570_v31 }
 0x2b3   :  { %v571_v51 = vsel %vm287_vm8, %v567_v9, %v569_v28 }
 0x2b4   :  { %1002 = vst.msk [vmem:[%s1526_s3 + $0x13] ss:$8 sm:$0x3] %vm576_vm3, %v571_v51 }
 0x2b5   :  { %v942_v10 = vpop.permute.xlu1 %941 }
 0x2b6   :  { %v945_v3 = vrot.slane %v942_v10, 1 }
 0x2b8   :  { %v947_v12 = vsel %vm287_vm8, %v942_v10, %v945_v3 }
 0x2b9   :  { %1031 = vst.msk [vmem:[%s1526_s3 + $0x4] ss:$8 sm:$0x3] %vm576_vm3, %v947_v12  ;;  %v944_v0 = vpop.permute.xlu1 %943 }
 0x2ba   :  { %v946_v13 = vrot.slane %v944_v0, 1 }
 0x2bc   :  { %v948_v1 = vsel %vm287_vm8, %v944_v0, %v946_v13 }
 0x2bd   :  { %1032 = vst.msk [vmem:[%s1526_s3 + $0x14] ss:$8 sm:$0x3] %vm576_vm3, %v948_v1 }
 0x2be   :  { %961 = vsyncpa [#allocation4], 1 }
 0x2bf   :  { %962 = vsyncpa [#allocation6], 1 }

</bundles_post_ra>
